<compile_context>
chip_gen: v5e
topology: v5e:2x2
jax: 0.10.0
libtpu: 0.0.40
codegen_flags: <defaults>
</compile_context>

<pallas_src>
import functools
import math

import jax
import jax.numpy as jnp
from jax.experimental import pallas as pl
from jax.experimental.pallas import tpu as pltpu


def _softplus(x):
    # Numerically stable softplus built only from ops that lower cleanly in Mosaic
    # (max / abs / exp / log).  Used identically in the kernel and the reference.
    return jnp.maximum(x, 0.0) + jnp.log(1.0 + jnp.exp(-jnp.abs(x)))


# ----------------------------------------------------------------------------
# The single fused kernel
# ----------------------------------------------------------------------------
def _cvae_fused_kernel(
    # ---- data / quadrature inputs ----
    y_ref, c_ref, eps_ref, gz_ref, gc_ref, zz_ref, cc_ref, avg_dc_ref, avg_dz_ref,
    # ---- encoder params ----
    enc_w1y_ref, enc_w1c_ref, enc_b1_ref, enc_w2_ref, enc_b2_ref,
    # ---- decoder params (packed in the wrapper) ----
    dec_az_ref, dec_ac_ref, dec_b1m_ref, dec_h1_ref, dec_w2_ref, dec_b2_ref,
    dec_bias0_ref,
    # ---- augmented-Lagrangian multipliers ----
    lam_z_ref, lam_c_ref, lam_cz1_ref, lam_cz2_ref,
    # ---- outputs ----
    loss_ref, int_z_ref, int_c_ref, int_cz_dc_ref, int_cz_dz_ref,
    *, log_sd, lambda0, beta, batch_scale,
):
    f32 = jnp.float32
    N, D = y_ref.shape
    K = c_ref.shape[1]
    G = gz_ref.shape[0]
    H = enc_b1_ref.shape[1]

    Y = y_ref[...]
    c = c_ref[...]

    # ---------------- encoder: (mu, sigma) = enc(Y, c); reparameterize ----------
    pre = jnp.dot(Y, enc_w1y_ref[...], preferred_element_type=f32) + enc_b1_ref[...]
    w1c = enc_w1c_ref[...]
    for j in range(K):                      # K-wide contraction stays on the VPU
        pre = pre + c[:, j:j + 1] * w1c[j:j + 1, :]
    h_enc = jnp.tanh(pre)                                              # [N, H]
    enc_out = (jnp.dot(h_enc, enc_w2_ref[...], preferred_element_type=f32)
               + enc_b2_ref[...])                                      # [N, 2]
    mu = enc_out[:, 0:1]
    sigma = _softplus(enc_out[:, 1:2]) + 1e-6
    z = mu + sigma * eps_ref[...]                                      # [N, 1]

    # ---------------- decoder on the batch: one wide hidden + one MXU matmul ----
    # hidden blocks (fz | fc_0..fc_{K-1} | fcz_0..fcz_{K-1}) are packed along the
    # feature axis; first layers are rank-1, so they are VPU broadcast mul-adds.
    W2 = dec_w2_ref[...]                                               # [(1+2K)H, D]
    pre_all = z * dec_az_ref[...] + dec_b1m_ref[...]                   # [N, (1+2K)H]
    Ac = dec_ac_ref[...]
    for j in range(K):
        pre_all = pre_all + c[:, j:j + 1] * Ac[j:j + 1, :]
    h_all = jnp.tanh(pre_all)
    y_pred = dec_bias0_ref[...] + jnp.dot(h_all, W2,
                                          preferred_element_type=f32)  # [N, D]

    # ---------------- per-function first-layer params (for the integrals) -------
    P = dec_h1_ref[...]                                                # [2+5K, H]
    fz_w1, fz_b1 = P[0:1, :], P[1:2, :]
    fc_w1 = P[2:2 + K, :]
    fc_b1 = P[2 + K:2 + 2 * K, :]
    fcz_w1z = P[2 + 2 * K:2 + 3 * K, :]
    fcz_w1c = P[2 + 3 * K:2 + 4 * K, :]
    fcz_b1 = P[2 + 4 * K:2 + 5 * K, :]
    B2 = dec_b2_ref[...]                                               # [1+2K, D]

    def aug(lam, integral):
        # augmented-Lagrangian term: sum(Lambda*I) + lambda0/2 * sum(I^2)
        return jnp.sum(lam * integral) + 0.5 * lambda0 * jnp.sum(integral * integral)

    # quadrature mean expressed as a matmul (rows sum to 1, so biases pass through)
    avg_row = jnp.full((1, G), 1.0 / G, dtype=f32)

    # ---- int_z = mean_z fz(grid_z)                                      [1, D] --
    h_gz = jnp.tanh(gz_ref[...] * fz_w1 + fz_b1)                       # [G, H]
    int_z = (jnp.dot(jnp.dot(avg_row, h_gz, preferred_element_type=f32),
                     W2[0:H, :], preferred_element_type=f32) + B2[0:1, :])
    int_z_ref[...] = int_z
    penalty = aug(lam_z_ref[...], int_z)

    # ---- int_c[j] = mean_c fc_j(grid_c)                                 [K, D] --
    gc = gc_ref[...]
    for j in range(K):
        h_gc = jnp.tanh(gc * fc_w1[j:j + 1, :] + fc_b1[j:j + 1, :])    # [G, H]
        row = (jnp.dot(jnp.dot(avg_row, h_gc, preferred_element_type=f32),
                       W2[(1 + j) * H:(2 + j) * H, :],
                       preferred_element_type=f32) + B2[1 + j:2 + j, :])
        int_c_ref[j:j + 1, :] = row
        penalty = penalty + aug(lam_c_ref[j:j + 1, :], row)

    # ---- int_cz_dc[j], int_cz_dz[j]: means of fcz_j over the (z,c) cross grid --
    zz = zz_ref[...]                    # [G*G, 1]  z replicated over the c grid
    cc = cc_ref[...]                    # [G*G, 1]  c tiled over the z grid
    avg_dc = avg_dc_ref[...]            # [G, G*G]  mean over the c grid (per z row)
    avg_dz = avg_dz_ref[...]            # [G, G*G]  mean over the z grid (per c row)
    for j in range(K):
        h_cross = jnp.tanh(zz * fcz_w1z[j:j + 1, :] + cc * fcz_w1c[j:j + 1, :]
                           + fcz_b1[j:j + 1, :])                       # [G*G, H]
        w2_j = W2[(1 + K + j) * H:(2 + K + j) * H, :]
        b2_j = B2[1 + K + j:2 + K + j, :]
        blk_dc = jnp.dot(jnp.dot(avg_dc, h_cross, preferred_element_type=f32),
                         w2_j, preferred_element_type=f32) + b2_j      # [G, D]
        blk_dz = jnp.dot(jnp.dot(avg_dz, h_cross, preferred_element_type=f32),
                         w2_j, preferred_element_type=f32) + b2_j      # [G, D]
        int_cz_dc_ref[j * G:(j + 1) * G, :] = blk_dc
        int_cz_dz_ref[j * G:(j + 1) * G, :] = blk_dz
        penalty = penalty + aug(lam_cz1_ref[j * G:(j + 1) * G, :], blk_dc)
        penalty = penalty + aug(lam_cz2_ref[j * G:(j + 1) * G, :], blk_dz)

    # ---------------- loss: Gaussian NLL + beta*KL, plus the ND penalty ---------
    LOG2PI = 1.8378770664093453
    inv_sd = math.exp(-log_sd)
    resid = (Y - y_pred) * inv_sd
    neg_loglik = jnp.sum(0.5 * resid * resid + (log_sd + 0.5 * LOG2PI))
    kl = 0.5 * jnp.sum(mu * mu + sigma * sigma - 2.0 * jnp.log(sigma) - 1.0)
    loss_ref[0, 0] = batch_scale * (neg_loglik + beta * kl) + penalty


# ----------------------------------------------------------------------------
# Wrapper: packs parameters once and launches the single fused kernel
# ----------------------------------------------------------------------------
def _pack_decoder(params, D, K, H):
    fz_w1, fz_b1, fz_w2, fz_b2 = params["fz"]
    # per-function first-layer params, stacked row-wise (used by the integrals)
    rows = [fz_w1.reshape(1, H), fz_b1.reshape(1, H)]
    rows += [params["fc"][j][0].reshape(1, H) for j in range(K)]       # fc_w1
    rows += [params["fc"][j][1].reshape(1, H) for j in range(K)]       # fc_b1
    rows += [params["fcz"][j][0][0:1, :] for j in range(K)]            # fcz_w1 (z)
    rows += [params["fcz"][j][0][1:2, :] for j in range(K)]            # fcz_w1 (c)
    rows += [params["fcz"][j][1].reshape(1, H) for j in range(K)]      # fcz_b1
    dec_h1 = jnp.concatenate(rows, axis=0)                             # [2+5K, H]

    # wide first-layer maps for the batch path (zeros where a block ignores z/c_j)
    zero = jnp.zeros((1, H), jnp.float32)
    dec_az = jnp.concatenate(
        [fz_w1.reshape(1, H)] + [zero] * K
        + [params["fcz"][j][0][0:1, :] for j in range(K)], axis=1)     # [1, (1+2K)H]
    ac_rows = []
    for j in range(K):
        blocks = [zero] * (1 + 2 * K)
        blocks[1 + j] = params["fc"][j][0].reshape(1, H)
        blocks[1 + K + j] = params["fcz"][j][0][1:2, :]
        ac_rows.append(jnp.concatenate(blocks, axis=1))
    dec_ac = jnp.concatenate(ac_rows, axis=0)                          # [K, (1+2K)H]
    dec_b1m = jnp.concatenate(
        [fz_b1.reshape(1, H)]
        + [params["fc"][j][1].reshape(1, H) for j in range(K)]
        + [params["fcz"][j][1].reshape(1, H) for j in range(K)], axis=1)

    # stacked second layer: one [ (1+2K)H, D ] matmul for the whole decoder
    dec_w2 = jnp.concatenate(
        [fz_w2] + [params["fc"][j][2] for j in range(K)]
        + [params["fcz"][j][2] for j in range(K)], axis=0)             # [(1+2K)H, D]
    dec_b2 = jnp.concatenate(
        [fz_b2.reshape(1, D)]
        + [params["fc"][j][3].reshape(1, D) for j in range(K)]
        + [params["fcz"][j][3].reshape(1, D) for j in range(K)], axis=0)  # [1+2K, D]
    dec_bias0 = params["intercept"].reshape(1, D) + jnp.sum(dec_b2, axis=0,
                                                            keepdims=True)
    return dec_h1, dec_az, dec_ac, dec_b1m, dec_w2, dec_b2, dec_bias0


def cvae_forward(params, Y, c, eps, grid_z, grid_c, lambdas,
                 *, beta=1.0, batch_scale=1.0, lambda0=1.0, log_sd=0.0):
    N, D = Y.shape
    K = c.shape[1]
    H = params["enc_b1"].shape[1]
    G = grid_z.shape[0]
    assert grid_c.shape[0] == G, "shared quadrature grid size assumed"
    assert params["enc_w2"].shape[1] // 2 == 1, "Neural Decomposition uses a 1-D latent"

    enc_w1y = params["enc_w1"][:D, :]
    enc_w1c = params["enc_w1"][D:, :]
    (dec_h1, dec_az, dec_ac, dec_b1m,
     dec_w2, dec_b2, dec_bias0) = _pack_decoder(params, D, K, H)

    # flattened (z, c) cross grid and constant quadrature-averaging matrices
    zz = jnp.repeat(grid_z, G, axis=0)                                 # [G*G, 1]
    cc = jnp.tile(grid_c, (G, 1))                                      # [G*G, 1]
    r = jnp.arange(G * G)
    avg_dc = ((r[None, :] // G) == jnp.arange(G)[:, None]).astype(jnp.float32) / G
    avg_dz = ((r[None, :] % G) == jnp.arange(G)[:, None]).astype(jnp.float32) / G

    Lam_z, Lam_c, Lam_cz1, Lam_cz2 = lambdas

    inputs = (Y, c, eps, grid_z, grid_c, zz, cc, avg_dc, avg_dz,
              enc_w1y, enc_w1c, params["enc_b1"], params["enc_w2"], params["enc_b2"],
              dec_az, dec_ac, dec_b1m, dec_h1, dec_w2, dec_b2, dec_bias0,
              Lam_z, Lam_c, Lam_cz1, Lam_cz2)

    kernel = functools.partial(_cvae_fused_kernel, log_sd=log_sd, lambda0=lambda0,
                               beta=beta, batch_scale=batch_scale)
    out = pl.pallas_call(
        kernel,
        out_shape=(
            jax.ShapeDtypeStruct((1, 1), jnp.float32),       # total loss (scalar)
            jax.ShapeDtypeStruct((1, D), jnp.float32),       # int_z
            jax.ShapeDtypeStruct((K, D), jnp.float32),       # int_c
            jax.ShapeDtypeStruct((K * G, D), jnp.float32),   # int_cz_dc
            jax.ShapeDtypeStruct((K * G, D), jnp.float32),   # int_cz_dz
        ),
        in_specs=[pl.BlockSpec(memory_space=pltpu.MemorySpace.VMEM)] * len(inputs),
        out_specs=(
            pl.BlockSpec(memory_space=pltpu.MemorySpace.SMEM),
            pl.BlockSpec(memory_space=pltpu.MemorySpace.VMEM),
            pl.BlockSpec(memory_space=pltpu.MemorySpace.VMEM),
            pl.BlockSpec(memory_space=pltpu.MemorySpace.VMEM),
            pl.BlockSpec(memory_space=pltpu.MemorySpace.VMEM),
        ),
    )(*inputs)
    total, int_z, int_c, int_cz_dc, int_cz_dz = out
    return total[0, 0], int_z, int_c, int_cz_dc, int_cz_dz
    # TODO(synk): when N grows beyond a few thousand rows, tile the batch terms
    # (encoder / decoder / NLL / KL) over a row grid with a scalar accumulator
    # instead of whole-array VMEM residency (v7x scoped-VMEM headroom).


# ----------------------------------------------------------------------------
# Pure-JAX reference (same math as the original module structure)
# ----------------------------------------------------------------------------
def _mlp_ref(x, w1, b1, w2, b2):
    return jnp.dot(jnp.tanh(jnp.dot(x, w1) + b1), w2) + b2


def cvae_forward_ref(params, Y, c, eps, grid_z, grid_c, lambdas,
                     *, beta, batch_scale, lambda0, log_sd):
    N, D = Y.shape
    K = c.shape[1]
    G = grid_z.shape[0]
    enc_out = _mlp_ref(jnp.concatenate([Y, c], axis=1), params["enc_w1"],
                       params["enc_b1"], params["enc_w2"], params["enc_b2"])
    mu = enc_out[:, 0:1]
    sigma = _softplus(enc_out[:, 1:2]) + 1e-6
    z = mu + sigma * eps
    y_pred = params["intercept"][None, :] + _mlp_ref(z, *params["fz"])
    for j in range(K):
        cj = c[:, j:j + 1]
        y_pred = y_pred + _mlp_ref(cj, *params["fc"][j])
        y_pred = y_pred + _mlp_ref(jnp.concatenate([z, cj], axis=1), *params["fcz"][j])

    int_z = jnp.mean(_mlp_ref(grid_z, *params["fz"]), axis=0, keepdims=True)
    zz = jnp.repeat(grid_z, G, axis=0)
    cc = jnp.tile(grid_c, (G, 1))
    cross = jnp.concatenate([zz, cc], axis=1)
    int_c_l, dc_l, dz_l = [], [], []
    for j in range(K):
        int_c_l.append(jnp.mean(_mlp_ref(grid_c, *params["fc"][j]), axis=0))
        fg = _mlp_ref(cross, *params["fcz"][j]).reshape(G, G, D)
        dc_l.append(jnp.mean(fg, axis=1))
        dz_l.append(jnp.mean(fg, axis=0))
    int_c = jnp.stack(int_c_l, axis=0)
    int_cz_dc = jnp.concatenate(dc_l, axis=0)
    int_cz_dz = jnp.concatenate(dz_l, axis=0)

    LOG2PI = 1.8378770664093453
    inv_sd = math.exp(-log_sd)
    resid = (Y - y_pred) * inv_sd
    neg_loglik = jnp.sum(0.5 * resid * resid + (log_sd + 0.5 * LOG2PI))
    kl = 0.5 * jnp.sum(mu * mu + sigma * sigma - 2.0 * jnp.log(sigma) - 1.0)

    Lz, Lc, L1, L2 = lambdas

    def aug(lam, integral):
        return jnp.sum(lam * integral) + 0.5 * lambda0 * jnp.sum(integral * integral)

    penalty = aug(Lz, int_z) + aug(Lc, int_c) + aug(L1, int_cz_dc) + aug(L2, int_cz_dz)
    total = batch_scale * (neg_loglik + beta * kl) + penalty
    return total, int_z, int_c, int_cz_dc, int_cz_dz


# ----------------------------------------------------------------------------
# Parameter initialization (encoder / decoder sub-modules are tanh MLPs, as in
# the Neural Decomposition reference implementation)
# ----------------------------------------------------------------------------
def init_params(key, D, K, Zd, H):
    def dense(k, din, dout, scale=0.1):
        kw, kb = jax.random.split(k)
        return (scale * jax.random.normal(kw, (din, dout), jnp.float32),
                scale * jax.random.normal(kb, (1, dout), jnp.float32))

    keys = jax.random.split(key, 8 + 4 * K)
    it = iter(keys)
    enc_w1, enc_b1 = dense(next(it), D + K, H)
    enc_w2, enc_b2 = dense(next(it), H, 2 * Zd)
    fz = dense(next(it), Zd, H) + dense(next(it), H, D)
    fc, fcz = [], []
    for _ in range(K):
        fc.append(dense(next(it), 1, H) + dense(next(it), H, D))
        fcz.append(dense(next(it), Zd + 1, H) + dense(next(it), H, D))
    intercept = 0.1 * jax.random.normal(next(it), (D,), jnp.float32)
    return {"enc_w1": enc_w1, "enc_b1": enc_b1, "enc_w2": enc_w2, "enc_b2": enc_b2,
            "fz": fz, "fc": fc, "fcz": fcz, "intercept": intercept}


if __name__ == "__main__":
    N, D, K, Zd, H, G = 8, 16, 2, 1, 32, 16

    key = jax.random.PRNGKey(0)
    kp, kY, kc, keps = jax.random.split(key, 4)
    params = init_params(kp, D, K, Zd, H)

    Y = jax.random.normal(kY, (N, D), jnp.float32)
    c = jax.random.uniform(kc, (N, K), jnp.float32)
    eps = jax.random.normal(keps, (N, Zd), jnp.float32)   # torch.randn_like(mu_z)

    grid_z = jnp.linspace(-2.0, 2.0, G, dtype=jnp.float32).reshape(G, 1)
    grid_c = jnp.linspace(0.0, 1.0, G, dtype=jnp.float32).reshape(G, 1)

    # augmented-Lagrangian multipliers (zero-initialized, as at start of training)
    lambdas = (
        jnp.zeros((1, D), jnp.float32),       # Lambda_z
        jnp.zeros((K, D), jnp.float32),       # Lambda_c
        jnp.zeros((K * G, D), jnp.float32),   # Lambda_cz_1
        jnp.zeros((K * G, D), jnp.float32),   # Lambda_cz_2
    )

    hyper = dict(beta=1.0, batch_scale=1.0, lambda0=1.0, log_sd=0.0)
    fwd = jax.jit(functools.partial(cvae_forward, **hyper))

    outs = jax.block_until_ready(fwd(params, Y, c, eps, grid_z, grid_c, lambdas))
    refs = cvae_forward_ref(params, Y, c, eps, grid_z, grid_c, lambdas, **hyper)

    total_loss, int_z, int_c, int_cz_dc, int_cz_dz = outs
    assert total_loss.shape == ()
    assert int_z.shape == (1, D)
    assert int_c.shape == (K, D)
    assert int_cz_dc.shape == (K * G, D)
    assert int_cz_dz.shape == (K * G, D)
    assert bool(jnp.isfinite(total_loss))

    names = ("total_loss", "int_z", "int_c", "int_cz_dc", "int_cz_dz")
    for name, got, want in zip(names, outs, refs):
        assert bool(jnp.allclose(got, want, rtol=1e-3, atol=1e-3)), (
            name, got, want)

    print("KERNEL_OK")
</pallas_src>

<mosaic_0001>
module attributes {stable_mosaic.version = 11 : i64} {
  func.func @_cvae_fused_kernel(%arg0: memref<8x16xf32, #tpu.memory_space<vmem>>, %arg1: memref<8x2xf32, #tpu.memory_space<vmem>>, %arg2: memref<8x1xf32, #tpu.memory_space<vmem>>, %arg3: memref<16x1xf32, #tpu.memory_space<vmem>>, %arg4: memref<16x1xf32, #tpu.memory_space<vmem>>, %arg5: memref<256x1xf32, #tpu.memory_space<vmem>>, %arg6: memref<256x1xf32, #tpu.memory_space<vmem>>, %arg7: memref<16x256xf32, #tpu.memory_space<vmem>>, %arg8: memref<16x256xf32, #tpu.memory_space<vmem>>, %arg9: memref<16x32xf32, #tpu.memory_space<vmem>>, %arg10: memref<2x32xf32, #tpu.memory_space<vmem>>, %arg11: memref<1x32xf32, #tpu.memory_space<vmem>>, %arg12: memref<32x2xf32, #tpu.memory_space<vmem>>, %arg13: memref<1x2xf32, #tpu.memory_space<vmem>>, %arg14: memref<1x160xf32, #tpu.memory_space<vmem>>, %arg15: memref<2x160xf32, #tpu.memory_space<vmem>>, %arg16: memref<1x160xf32, #tpu.memory_space<vmem>>, %arg17: memref<12x32xf32, #tpu.memory_space<vmem>>, %arg18: memref<160x16xf32, #tpu.memory_space<vmem>>, %arg19: memref<5x16xf32, #tpu.memory_space<vmem>>, %arg20: memref<1x16xf32, #tpu.memory_space<vmem>>, %arg21: memref<1x16xf32, #tpu.memory_space<vmem>>, %arg22: memref<2x16xf32, #tpu.memory_space<vmem>>, %arg23: memref<32x16xf32, #tpu.memory_space<vmem>>, %arg24: memref<32x16xf32, #tpu.memory_space<vmem>>, %arg25: memref<1x1xf32, #tpu.memory_space<smem>>, %arg26: memref<1x16xf32, #tpu.memory_space<vmem>>, %arg27: memref<2x16xf32, #tpu.memory_space<vmem>>, %arg28: memref<32x16xf32, #tpu.memory_space<vmem>>, %arg29: memref<32x16xf32, #tpu.memory_space<vmem>>) attributes {dimension_semantics = [], scalar_prefetch = 0 : i64, scratch_operands = 0 : i64, tpu.core_type = #tpu.core_type<tc>} {
    %c0 = arith.constant 0 : index
    %c0_0 = arith.constant 0 : index
    %0 = vector.load %arg0[%c0, %c0_0] : memref<8x16xf32, #tpu.memory_space<vmem>>, vector<8x16xf32>
    %c0_1 = arith.constant 0 : index
    %c0_2 = arith.constant 0 : index
    %1 = vector.load %arg1[%c0_1, %c0_2] : memref<8x2xf32, #tpu.memory_space<vmem>>, vector<8x2xf32>
    %c0_3 = arith.constant 0 : index
    %c0_4 = arith.constant 0 : index
    %2 = vector.load %arg9[%c0_3, %c0_4] : memref<16x32xf32, #tpu.memory_space<vmem>>, vector<16x32xf32>
    %cst = arith.constant dense<0.000000e+00> : vector<8x32xf32>
    %3 = tpu.matmul %0, %2, %cst {dimension_numbers = #tpu.dot_dimension_numbers<[1], [0], [0], [1], [0, 0, 1, 1], [], []>} : vector<8x16xf32>, vector<16x32xf32>, vector<8x32xf32> -> vector<8x32xf32>
    %c0_5 = arith.constant 0 : index
    %c0_6 = arith.constant 0 : index
    %4 = vector.load %arg11[%c0_5, %c0_6] : memref<1x32xf32, #tpu.memory_space<vmem>>, vector<1x32xf32>
    %5 = vector.broadcast %4 : vector<1x32xf32> to vector<8x32xf32>
    %6 = arith.addf %3, %5 : vector<8x32xf32>
    %c0_7 = arith.constant 0 : index
    %c0_8 = arith.constant 0 : index
    %7 = vector.load %arg10[%c0_7, %c0_8] : memref<2x32xf32, #tpu.memory_space<vmem>>, vector<2x32xf32>
    %8 = vector.extract_strided_slice %1 {offsets = [0, 0], sizes = [8, 1], strides = [1, 1]} : vector<8x2xf32> to vector<8x1xf32>
    %9 = vector.extract_strided_slice %7 {offsets = [0, 0], sizes = [1, 32], strides = [1, 1]} : vector<2x32xf32> to vector<1x32xf32>
    %10 = vector.broadcast %8 : vector<8x1xf32> to vector<8x32xf32>
    %11 = vector.broadcast %9 : vector<1x32xf32> to vector<8x32xf32>
    %12 = arith.mulf %10, %11 : vector<8x32xf32>
    %13 = arith.addf %6, %12 : vector<8x32xf32>
    %14 = vector.extract_strided_slice %1 {offsets = [0, 1], sizes = [8, 1], strides = [1, 1]} : vector<8x2xf32> to vector<8x1xf32>
    %15 = vector.extract_strided_slice %7 {offsets = [1, 0], sizes = [1, 32], strides = [1, 1]} : vector<2x32xf32> to vector<1x32xf32>
    %16 = vector.broadcast %14 : vector<8x1xf32> to vector<8x32xf32>
    %17 = vector.broadcast %15 : vector<1x32xf32> to vector<8x32xf32>
    %18 = arith.mulf %16, %17 : vector<8x32xf32>
    %19 = arith.addf %13, %18 : vector<8x32xf32>
    %20 = math.tanh %19 : vector<8x32xf32>
    %c0_9 = arith.constant 0 : index
    %c0_10 = arith.constant 0 : index
    %21 = vector.load %arg12[%c0_9, %c0_10] : memref<32x2xf32, #tpu.memory_space<vmem>>, vector<32x2xf32>
    %cst_11 = arith.constant dense<0.000000e+00> : vector<8x2xf32>
    %22 = tpu.matmul %20, %21, %cst_11 {dimension_numbers = #tpu.dot_dimension_numbers<[1], [0], [0], [1], [0, 0, 1, 1], [], []>} : vector<8x32xf32>, vector<32x2xf32>, vector<8x2xf32> -> vector<8x2xf32>
    %c0_12 = arith.constant 0 : index
    %c0_13 = arith.constant 0 : index
    %23 = vector.load %arg13[%c0_12, %c0_13] : memref<1x2xf32, #tpu.memory_space<vmem>>, vector<1x2xf32>
    %24 = vector.broadcast %23 : vector<1x2xf32> to vector<8x2xf32>
    %25 = arith.addf %22, %24 : vector<8x2xf32>
    %26 = vector.extract_strided_slice %25 {offsets = [0, 0], sizes = [8, 1], strides = [1, 1]} : vector<8x2xf32> to vector<8x1xf32>
    %27 = vector.extract_strided_slice %25 {offsets = [0, 1], sizes = [8, 1], strides = [1, 1]} : vector<8x2xf32> to vector<8x1xf32>
    %cst_14 = arith.constant 0.000000e+00 : f32
    %28 = vector.broadcast %cst_14 : f32 to vector<8x1xf32>
    %29 = arith.maximumf %27, %28 : vector<8x1xf32>
    %30 = math.absf %27 : vector<8x1xf32>
    %cst_15 = arith.constant 0.000000e+00 : f32
    %31 = vector.broadcast %cst_15 : f32 to vector<8x1xf32>
    %32 = arith.subf %31, %30 : vector<8x1xf32>
    %33 = math.exp %32 : vector<8x1xf32>
    %cst_16 = arith.constant 1.000000e+00 : f32
    %34 = vector.broadcast %cst_16 : f32 to vector<8x1xf32>
    %35 = arith.addf %34, %33 : vector<8x1xf32>
    %36 = math.log %35 : vector<8x1xf32>
    %37 = arith.addf %29, %36 : vector<8x1xf32>
    %cst_17 = arith.constant 9.99999997E-7 : f32
    %38 = vector.broadcast %cst_17 : f32 to vector<8x1xf32>
    %39 = arith.addf %37, %38 : vector<8x1xf32>
    %c0_18 = arith.constant 0 : index
    %c0_19 = arith.constant 0 : index
    %40 = vector.load %arg2[%c0_18, %c0_19] : memref<8x1xf32, #tpu.memory_space<vmem>>, vector<8x1xf32>
    %41 = arith.mulf %39, %40 : vector<8x1xf32>
    %42 = arith.addf %26, %41 : vector<8x1xf32>
    %c0_20 = arith.constant 0 : index
    %c0_21 = arith.constant 0 : index
    %43 = vector.load %arg18[%c0_20, %c0_21] : memref<160x16xf32, #tpu.memory_space<vmem>>, vector<160x16xf32>
    %c0_22 = arith.constant 0 : index
    %c0_23 = arith.constant 0 : index
    %44 = vector.load %arg14[%c0_22, %c0_23] : memref<1x160xf32, #tpu.memory_space<vmem>>, vector<1x160xf32>
    %45 = vector.broadcast %42 : vector<8x1xf32> to vector<8x160xf32>
    %46 = vector.broadcast %44 : vector<1x160xf32> to vector<8x160xf32>
    %47 = arith.mulf %45, %46 : vector<8x160xf32>
    %c0_24 = arith.constant 0 : index
    %c0_25 = arith.constant 0 : index
    %48 = vector.load %arg16[%c0_24, %c0_25] : memref<1x160xf32, #tpu.memory_space<vmem>>, vector<1x160xf32>
    %49 = vector.broadcast %48 : vector<1x160xf32> to vector<8x160xf32>
    %50 = arith.addf %47, %49 : vector<8x160xf32>
    %c0_26 = arith.constant 0 : index
    %c0_27 = arith.constant 0 : index
    %51 = vector.load %arg15[%c0_26, %c0_27] : memref<2x160xf32, #tpu.memory_space<vmem>>, vector<2x160xf32>
    %52 = vector.extract_strided_slice %1 {offsets = [0, 0], sizes = [8, 1], strides = [1, 1]} : vector<8x2xf32> to vector<8x1xf32>
    %53 = vector.extract_strided_slice %51 {offsets = [0, 0], sizes = [1, 160], strides = [1, 1]} : vector<2x160xf32> to vector<1x160xf32>
    %54 = vector.broadcast %52 : vector<8x1xf32> to vector<8x160xf32>
    %55 = vector.broadcast %53 : vector<1x160xf32> to vector<8x160xf32>
    %56 = arith.mulf %54, %55 : vector<8x160xf32>
    %57 = arith.addf %50, %56 : vector<8x160xf32>
    %58 = vector.extract_strided_slice %1 {offsets = [0, 1], sizes = [8, 1], strides = [1, 1]} : vector<8x2xf32> to vector<8x1xf32>
    %59 = vector.extract_strided_slice %51 {offsets = [1, 0], sizes = [1, 160], strides = [1, 1]} : vector<2x160xf32> to vector<1x160xf32>
    %60 = vector.broadcast %58 : vector<8x1xf32> to vector<8x160xf32>
    %61 = vector.broadcast %59 : vector<1x160xf32> to vector<8x160xf32>
    %62 = arith.mulf %60, %61 : vector<8x160xf32>
    %63 = arith.addf %57, %62 : vector<8x160xf32>
    %64 = math.tanh %63 : vector<8x160xf32>
    %c0_28 = arith.constant 0 : index
    %c0_29 = arith.constant 0 : index
    %65 = vector.load %arg20[%c0_28, %c0_29] : memref<1x16xf32, #tpu.memory_space<vmem>>, vector<1x16xf32>
    %cst_30 = arith.constant dense<0.000000e+00> : vector<8x16xf32>
    %66 = tpu.matmul %64, %43, %cst_30 {dimension_numbers = #tpu.dot_dimension_numbers<[1], [0], [0], [1], [0, 0, 1, 1], [], []>} : vector<8x160xf32>, vector<160x16xf32>, vector<8x16xf32> -> vector<8x16xf32>
    %67 = vector.broadcast %65 : vector<1x16xf32> to vector<8x16xf32>
    %68 = arith.addf %67, %66 : vector<8x16xf32>
    %c0_31 = arith.constant 0 : index
    %c0_32 = arith.constant 0 : index
    %69 = vector.load %arg17[%c0_31, %c0_32] : memref<12x32xf32, #tpu.memory_space<vmem>>, vector<12x32xf32>
    %70 = vector.extract_strided_slice %69 {offsets = [0, 0], sizes = [1, 32], strides = [1, 1]} : vector<12x32xf32> to vector<1x32xf32>
    %71 = vector.extract_strided_slice %69 {offsets = [1, 0], sizes = [1, 32], strides = [1, 1]} : vector<12x32xf32> to vector<1x32xf32>
    %72 = vector.extract_strided_slice %69 {offsets = [2, 0], sizes = [2, 32], strides = [1, 1]} : vector<12x32xf32> to vector<2x32xf32>
    %73 = vector.extract_strided_slice %69 {offsets = [4, 0], sizes = [2, 32], strides = [1, 1]} : vector<12x32xf32> to vector<2x32xf32>
    %74 = vector.extract_strided_slice %69 {offsets = [6, 0], sizes = [2, 32], strides = [1, 1]} : vector<12x32xf32> to vector<2x32xf32>
    %75 = vector.extract_strided_slice %69 {offsets = [8, 0], sizes = [2, 32], strides = [1, 1]} : vector<12x32xf32> to vector<2x32xf32>
    %76 = vector.extract_strided_slice %69 {offsets = [10, 0], sizes = [2, 32], strides = [1, 1]} : vector<12x32xf32> to vector<2x32xf32>
    %c0_33 = arith.constant 0 : index
    %c0_34 = arith.constant 0 : index
    %77 = vector.load %arg19[%c0_33, %c0_34] : memref<5x16xf32, #tpu.memory_space<vmem>>, vector<5x16xf32>
    %cst_35 = arith.constant 6.250000e-02 : f32
    %78 = vector.broadcast %cst_35 : f32 to vector<1x16xf32>
    %c0_36 = arith.constant 0 : index
    %c0_37 = arith.constant 0 : index
    %79 = vector.load %arg3[%c0_36, %c0_37] : memref<16x1xf32, #tpu.memory_space<vmem>>, vector<16x1xf32>
    %80 = vector.broadcast %79 : vector<16x1xf32> to vector<16x32xf32>
    %81 = vector.broadcast %70 : vector<1x32xf32> to vector<16x32xf32>
    %82 = arith.mulf %80, %81 : vector<16x32xf32>
    %83 = vector.broadcast %71 : vector<1x32xf32> to vector<16x32xf32>
    %84 = arith.addf %82, %83 : vector<16x32xf32>
    %85 = math.tanh %84 : vector<16x32xf32>
    %cst_38 = arith.constant dense<0.000000e+00> : vector<1x32xf32>
    %86 = tpu.matmul %78, %85, %cst_38 {dimension_numbers = #tpu.dot_dimension_numbers<[1], [0], [0], [1], [0, 0, 1, 1], [], []>} : vector<1x16xf32>, vector<16x32xf32>, vector<1x32xf32> -> vector<1x32xf32>
    %87 = vector.extract_strided_slice %43 {offsets = [0, 0], sizes = [32, 16], strides = [1, 1]} : vector<160x16xf32> to vector<32x16xf32>
    %cst_39 = arith.constant dense<0.000000e+00> : vector<1x16xf32>
    %88 = tpu.matmul %86, %87, %cst_39 {dimension_numbers = #tpu.dot_dimension_numbers<[1], [0], [0], [1], [0, 0, 1, 1], [], []>} : vector<1x32xf32>, vector<32x16xf32>, vector<1x16xf32> -> vector<1x16xf32>
    %89 = vector.extract_strided_slice %77 {offsets = [0, 0], sizes = [1, 16], strides = [1, 1]} : vector<5x16xf32> to vector<1x16xf32>
    %90 = arith.addf %88, %89 : vector<1x16xf32>
    %c0_40 = arith.constant 0 : index
    %c0_41 = arith.constant 0 : index
    %91 = vector.load %arg26[%c0_40, %c0_41] : memref<1x16xf32, #tpu.memory_space<vmem>>, vector<1x16xf32>
    tpu.vector_store %arg26[%c0_40, %c0_41], %90 {strides = array<i32>} : memref<1x16xf32, #tpu.memory_space<vmem>>, vector<1x16xf32>,
    %c0_42 = arith.constant 0 : index
    %c0_43 = arith.constant 0 : index
    %92 = vector.load %arg21[%c0_42, %c0_43] : memref<1x16xf32, #tpu.memory_space<vmem>>, vector<1x16xf32>
    %93 = arith.mulf %92, %90 : vector<1x16xf32>
    %94 = vector.shape_cast %93 : vector<1x16xf32> to vector<1x1x16xf32>
    %cst_44 = arith.constant dense<0.000000e+00> : vector<1xf32>
    %95 = vector.multi_reduction <add>, %94, %cst_44 [1, 2] : vector<1x1x16xf32> to vector<1xf32>
    %96 = vector.shape_cast %95 : vector<1xf32> to vector<1x1x1xf32>
    %97 = vector.extract %96[0, 0, 0] : f32 from vector<1x1x1xf32>
    %98 = arith.mulf %90, %90 : vector<1x16xf32>
    %99 = vector.shape_cast %98 : vector<1x16xf32> to vector<1x1x16xf32>
    %cst_45 = arith.constant dense<0.000000e+00> : vector<1xf32>
    %100 = vector.multi_reduction <add>, %99, %cst_45 [1, 2] : vector<1x1x16xf32> to vector<1xf32>
    %101 = vector.shape_cast %100 : vector<1xf32> to vector<1x1x1xf32>
    %102 = vector.extract %101[0, 0, 0] : f32 from vector<1x1x1xf32>
    %cst_46 = arith.constant 5.000000e-01 : f32
    %103 = arith.mulf %cst_46, %102 : f32
    %104 = arith.addf %97, %103 : f32
    %c0_47 = arith.constant 0 : index
    %c0_48 = arith.constant 0 : index
    %105 = vector.load %arg4[%c0_47, %c0_48] : memref<16x1xf32, #tpu.memory_space<vmem>>, vector<16x1xf32>
    %106 = vector.extract_strided_slice %72 {offsets = [0, 0], sizes = [1, 32], strides = [1, 1]} : vector<2x32xf32> to vector<1x32xf32>
    %107 = vector.broadcast %105 : vector<16x1xf32> to vector<16x32xf32>
    %108 = vector.broadcast %106 : vector<1x32xf32> to vector<16x32xf32>
    %109 = arith.mulf %107, %108 : vector<16x32xf32>
    %110 = vector.extract_strided_slice %73 {offsets = [0, 0], sizes = [1, 32], strides = [1, 1]} : vector<2x32xf32> to vector<1x32xf32>
    %111 = vector.broadcast %110 : vector<1x32xf32> to vector<16x32xf32>
    %112 = arith.addf %109, %111 : vector<16x32xf32>
    %113 = math.tanh %112 : vector<16x32xf32>
    %cst_49 = arith.constant dense<0.000000e+00> : vector<1x32xf32>
    %114 = tpu.matmul %78, %113, %cst_49 {dimension_numbers = #tpu.dot_dimension_numbers<[1], [0], [0], [1], [0, 0, 1, 1], [], []>} : vector<1x16xf32>, vector<16x32xf32>, vector<1x32xf32> -> vector<1x32xf32>
    %115 = vector.extract_strided_slice %43 {offsets = [32, 0], sizes = [32, 16], strides = [1, 1]} : vector<160x16xf32> to vector<32x16xf32>
    %cst_50 = arith.constant dense<0.000000e+00> : vector<1x16xf32>
    %116 = tpu.matmul %114, %115, %cst_50 {dimension_numbers = #tpu.dot_dimension_numbers<[1], [0], [0], [1], [0, 0, 1, 1], [], []>} : vector<1x32xf32>, vector<32x16xf32>, vector<1x16xf32> -> vector<1x16xf32>
    %117 = vector.extract_strided_slice %77 {offsets = [1, 0], sizes = [1, 16], strides = [1, 1]} : vector<5x16xf32> to vector<1x16xf32>
    %118 = arith.addf %116, %117 : vector<1x16xf32>
    %c0_51 = arith.constant 0 : index
    %c0_52 = arith.constant 0 : index
    %119 = vector.load %arg27[%c0_51, %c0_52] : memref<2x16xf32, #tpu.memory_space<vmem>>, vector<1x16xf32>
    tpu.vector_store %arg27[%c0_51, %c0_52], %118 {strides = array<i32>} : memref<2x16xf32, #tpu.memory_space<vmem>>, vector<1x16xf32>,
    %c0_53 = arith.constant 0 : index
    %c0_54 = arith.constant 0 : index
    %120 = vector.load %arg22[%c0_53, %c0_54] : memref<2x16xf32, #tpu.memory_space<vmem>>, vector<1x16xf32>
    %121 = arith.mulf %120, %118 : vector<1x16xf32>
    %122 = vector.shape_cast %121 : vector<1x16xf32> to vector<1x1x16xf32>
    %cst_55 = arith.constant dense<0.000000e+00> : vector<1xf32>
    %123 = vector.multi_reduction <add>, %122, %cst_55 [1, 2] : vector<1x1x16xf32> to vector<1xf32>
    %124 = vector.shape_cast %123 : vector<1xf32> to vector<1x1x1xf32>
    %125 = vector.extract %124[0, 0, 0] : f32 from vector<1x1x1xf32>
    %126 = arith.mulf %118, %118 : vector<1x16xf32>
    %127 = vector.shape_cast %126 : vector<1x16xf32> to vector<1x1x16xf32>
    %cst_56 = arith.constant dense<0.000000e+00> : vector<1xf32>
    %128 = vector.multi_reduction <add>, %127, %cst_56 [1, 2] : vector<1x1x16xf32> to vector<1xf32>
    %129 = vector.shape_cast %128 : vector<1xf32> to vector<1x1x1xf32>
    %130 = vector.extract %129[0, 0, 0] : f32 from vector<1x1x1xf32>
    %cst_57 = arith.constant 5.000000e-01 : f32
    %131 = arith.mulf %cst_57, %130 : f32
    %132 = arith.addf %125, %131 : f32
    %133 = arith.addf %104, %132 : f32
    %134 = vector.extract_strided_slice %72 {offsets = [1, 0], sizes = [1, 32], strides = [1, 1]} : vector<2x32xf32> to vector<1x32xf32>
    %135 = vector.broadcast %105 : vector<16x1xf32> to vector<16x32xf32>
    %136 = vector.broadcast %134 : vector<1x32xf32> to vector<16x32xf32>
    %137 = arith.mulf %135, %136 : vector<16x32xf32>
    %138 = vector.extract_strided_slice %73 {offsets = [1, 0], sizes = [1, 32], strides = [1, 1]} : vector<2x32xf32> to vector<1x32xf32>
    %139 = vector.broadcast %138 : vector<1x32xf32> to vector<16x32xf32>
    %140 = arith.addf %137, %139 : vector<16x32xf32>
    %141 = math.tanh %140 : vector<16x32xf32>
    %cst_58 = arith.constant dense<0.000000e+00> : vector<1x32xf32>
    %142 = tpu.matmul %78, %141, %cst_58 {dimension_numbers = #tpu.dot_dimension_numbers<[1], [0], [0], [1], [0, 0, 1, 1], [], []>} : vector<1x16xf32>, vector<16x32xf32>, vector<1x32xf32> -> vector<1x32xf32>
    %143 = vector.extract_strided_slice %43 {offsets = [64, 0], sizes = [32, 16], strides = [1, 1]} : vector<160x16xf32> to vector<32x16xf32>
    %cst_59 = arith.constant dense<0.000000e+00> : vector<1x16xf32>
    %144 = tpu.matmul %142, %143, %cst_59 {dimension_numbers = #tpu.dot_dimension_numbers<[1], [0], [0], [1], [0, 0, 1, 1], [], []>} : vector<1x32xf32>, vector<32x16xf32>, vector<1x16xf32> -> vector<1x16xf32>
    %145 = vector.extract_strided_slice %77 {offsets = [2, 0], sizes = [1, 16], strides = [1, 1]} : vector<5x16xf32> to vector<1x16xf32>
    %146 = arith.addf %144, %145 : vector<1x16xf32>
    %c1 = arith.constant 1 : index
    %c0_60 = arith.constant 0 : index
    %147 = vector.load %arg27[%c1, %c0_60] : memref<2x16xf32, #tpu.memory_space<vmem>>, vector<1x16xf32>
    tpu.vector_store %arg27[%c1, %c0_60], %146 {strides = array<i32>} : memref<2x16xf32, #tpu.memory_space<vmem>>, vector<1x16xf32>,
    %c1_61 = arith.constant 1 : index
    %c0_62 = arith.constant 0 : index
    %148 = vector.load %arg22[%c1_61, %c0_62] : memref<2x16xf32, #tpu.memory_space<vmem>>, vector<1x16xf32>
    %149 = arith.mulf %148, %146 : vector<1x16xf32>
    %150 = vector.shape_cast %149 : vector<1x16xf32> to vector<1x1x16xf32>
    %cst_63 = arith.constant dense<0.000000e+00> : vector<1xf32>
    %151 = vector.multi_reduction <add>, %150, %cst_63 [1, 2] : vector<1x1x16xf32> to vector<1xf32>
    %152 = vector.shape_cast %151 : vector<1xf32> to vector<1x1x1xf32>
    %153 = vector.extract %152[0, 0, 0] : f32 from vector<1x1x1xf32>
    %154 = arith.mulf %146, %146 : vector<1x16xf32>
    %155 = vector.shape_cast %154 : vector<1x16xf32> to vector<1x1x16xf32>
    %cst_64 = arith.constant dense<0.000000e+00> : vector<1xf32>
    %156 = vector.multi_reduction <add>, %155, %cst_64 [1, 2] : vector<1x1x16xf32> to vector<1xf32>
    %157 = vector.shape_cast %156 : vector<1xf32> to vector<1x1x1xf32>
    %158 = vector.extract %157[0, 0, 0] : f32 from vector<1x1x1xf32>
    %cst_65 = arith.constant 5.000000e-01 : f32
    %159 = arith.mulf %cst_65, %158 : f32
    %160 = arith.addf %153, %159 : f32
    %161 = arith.addf %133, %160 : f32
    %c0_66 = arith.constant 0 : index
    %c0_67 = arith.constant 0 : index
    %162 = vector.load %arg5[%c0_66, %c0_67] : memref<256x1xf32, #tpu.memory_space<vmem>>, vector<256x1xf32>
    %c0_68 = arith.constant 0 : index
    %c0_69 = arith.constant 0 : index
    %163 = vector.load %arg6[%c0_68, %c0_69] : memref<256x1xf32, #tpu.memory_space<vmem>>, vector<256x1xf32>
    %c0_70 = arith.constant 0 : index
    %c0_71 = arith.constant 0 : index
    %164 = vector.load %arg7[%c0_70, %c0_71] : memref<16x256xf32, #tpu.memory_space<vmem>>, vector<16x256xf32>
    %c0_72 = arith.constant 0 : index
    %c0_73 = arith.constant 0 : index
    %165 = vector.load %arg8[%c0_72, %c0_73] : memref<16x256xf32, #tpu.memory_space<vmem>>, vector<16x256xf32>
    %166 = vector.extract_strided_slice %74 {offsets = [0, 0], sizes = [1, 32], strides = [1, 1]} : vector<2x32xf32> to vector<1x32xf32>
    %167 = vector.broadcast %162 : vector<256x1xf32> to vector<256x32xf32>
    %168 = vector.broadcast %166 : vector<1x32xf32> to vector<256x32xf32>
    %169 = arith.mulf %167, %168 : vector<256x32xf32>
    %170 = vector.extract_strided_slice %75 {offsets = [0, 0], sizes = [1, 32], strides = [1, 1]} : vector<2x32xf32> to vector<1x32xf32>
    %171 = vector.broadcast %163 : vector<256x1xf32> to vector<256x32xf32>
    %172 = vector.broadcast %170 : vector<1x32xf32> to vector<256x32xf32>
    %173 = arith.mulf %171, %172 : vector<256x32xf32>
    %174 = arith.addf %169, %173 : vector<256x32xf32>
    %175 = vector.extract_strided_slice %76 {offsets = [0, 0], sizes = [1, 32], strides = [1, 1]} : vector<2x32xf32> to vector<1x32xf32>
    %176 = vector.broadcast %175 : vector<1x32xf32> to vector<256x32xf32>
    %177 = arith.addf %174, %176 : vector<256x32xf32>
    %178 = math.tanh %177 : vector<256x32xf32>
    %179 = vector.extract_strided_slice %43 {offsets = [96, 0], sizes = [32, 16], strides = [1, 1]} : vector<160x16xf32> to vector<32x16xf32>
    %180 = vector.extract_strided_slice %77 {offsets = [3, 0], sizes = [1, 16], strides = [1, 1]} : vector<5x16xf32> to vector<1x16xf32>
    %cst_74 = arith.constant dense<0.000000e+00> : vector<16x32xf32>
    %181 = tpu.matmul %164, %178, %cst_74 {dimension_numbers = #tpu.dot_dimension_numbers<[1], [0], [0], [1], [0, 0, 1, 1], [], []>} : vector<16x256xf32>, vector<256x32xf32>, vector<16x32xf32> -> vector<16x32xf32>
    %cst_75 = arith.constant dense<0.000000e+00> : vector<16x16xf32>
    %182 = tpu.matmul %181, %179, %cst_75 {dimension_numbers = #tpu.dot_dimension_numbers<[1], [0], [0], [1], [0, 0, 1, 1], [], []>} : vector<16x32xf32>, vector<32x16xf32>, vector<16x16xf32> -> vector<16x16xf32>
    %183 = vector.broadcast %180 : vector<1x16xf32> to vector<16x16xf32>
    %184 = arith.addf %182, %183 : vector<16x16xf32>
    %cst_76 = arith.constant dense<0.000000e+00> : vector<16x32xf32>
    %185 = tpu.matmul %165, %178, %cst_76 {dimension_numbers = #tpu.dot_dimension_numbers<[1], [0], [0], [1], [0, 0, 1, 1], [], []>} : vector<16x256xf32>, vector<256x32xf32>, vector<16x32xf32> -> vector<16x32xf32>
    %cst_77 = arith.constant dense<0.000000e+00> : vector<16x16xf32>
    %186 = tpu.matmul %185, %179, %cst_77 {dimension_numbers = #tpu.dot_dimension_numbers<[1], [0], [0], [1], [0, 0, 1, 1], [], []>} : vector<16x32xf32>, vector<32x16xf32>, vector<16x16xf32> -> vector<16x16xf32>
    %187 = vector.broadcast %180 : vector<1x16xf32> to vector<16x16xf32>
    %188 = arith.addf %186, %187 : vector<16x16xf32>
    %c0_78 = arith.constant 0 : index
    %c0_79 = arith.constant 0 : index
    %189 = vector.load %arg28[%c0_78, %c0_79] : memref<32x16xf32, #tpu.memory_space<vmem>>, vector<16x16xf32>
    tpu.vector_store %arg28[%c0_78, %c0_79], %184 {strides = array<i32>} : memref<32x16xf32, #tpu.memory_space<vmem>>, vector<16x16xf32>,
    %c0_80 = arith.constant 0 : index
    %c0_81 = arith.constant 0 : index
    %190 = vector.load %arg29[%c0_80, %c0_81] : memref<32x16xf32, #tpu.memory_space<vmem>>, vector<16x16xf32>
    tpu.vector_store %arg29[%c0_80, %c0_81], %188 {strides = array<i32>} : memref<32x16xf32, #tpu.memory_space<vmem>>, vector<16x16xf32>,
    %c0_82 = arith.constant 0 : index
    %c0_83 = arith.constant 0 : index
    %191 = vector.load %arg23[%c0_82, %c0_83] : memref<32x16xf32, #tpu.memory_space<vmem>>, vector<16x16xf32>
    %192 = arith.mulf %191, %184 : vector<16x16xf32>
    %193 = vector.shape_cast %192 : vector<16x16xf32> to vector<1x16x16xf32>
    %cst_84 = arith.constant dense<0.000000e+00> : vector<1xf32>
    %194 = vector.multi_reduction <add>, %193, %cst_84 [1, 2] : vector<1x16x16xf32> to vector<1xf32>
    %195 = vector.shape_cast %194 : vector<1xf32> to vector<1x1x1xf32>
    %196 = vector.extract %195[0, 0, 0] : f32 from vector<1x1x1xf32>
    %197 = arith.mulf %184, %184 : vector<16x16xf32>
    %198 = vector.shape_cast %197 : vector<16x16xf32> to vector<1x16x16xf32>
    %cst_85 = arith.constant dense<0.000000e+00> : vector<1xf32>
    %199 = vector.multi_reduction <add>, %198, %cst_85 [1, 2] : vector<1x16x16xf32> to vector<1xf32>
    %200 = vector.shape_cast %199 : vector<1xf32> to vector<1x1x1xf32>
    %201 = vector.extract %200[0, 0, 0] : f32 from vector<1x1x1xf32>
    %cst_86 = arith.constant 5.000000e-01 : f32
    %202 = arith.mulf %cst_86, %201 : f32
    %203 = arith.addf %196, %202 : f32
    %204 = arith.addf %161, %203 : f32
    %c0_87 = arith.constant 0 : index
    %c0_88 = arith.constant 0 : index
    %205 = vector.load %arg24[%c0_87, %c0_88] : memref<32x16xf32, #tpu.memory_space<vmem>>, vector<16x16xf32>
    %206 = arith.mulf %205, %188 : vector<16x16xf32>
    %207 = vector.shape_cast %206 : vector<16x16xf32> to vector<1x16x16xf32>
    %cst_89 = arith.constant dense<0.000000e+00> : vector<1xf32>
    %208 = vector.multi_reduction <add>, %207, %cst_89 [1, 2] : vector<1x16x16xf32> to vector<1xf32>
    %209 = vector.shape_cast %208 : vector<1xf32> to vector<1x1x1xf32>
    %210 = vector.extract %209[0, 0, 0] : f32 from vector<1x1x1xf32>
    %211 = arith.mulf %188, %188 : vector<16x16xf32>
    %212 = vector.shape_cast %211 : vector<16x16xf32> to vector<1x16x16xf32>
    %cst_90 = arith.constant dense<0.000000e+00> : vector<1xf32>
    %213 = vector.multi_reduction <add>, %212, %cst_90 [1, 2] : vector<1x16x16xf32> to vector<1xf32>
    %214 = vector.shape_cast %213 : vector<1xf32> to vector<1x1x1xf32>
    %215 = vector.extract %214[0, 0, 0] : f32 from vector<1x1x1xf32>
    %cst_91 = arith.constant 5.000000e-01 : f32
    %216 = arith.mulf %cst_91, %215 : f32
    %217 = arith.addf %210, %216 : f32
    %218 = arith.addf %204, %217 : f32
    %219 = vector.extract_strided_slice %74 {offsets = [1, 0], sizes = [1, 32], strides = [1, 1]} : vector<2x32xf32> to vector<1x32xf32>
    %220 = vector.broadcast %162 : vector<256x1xf32> to vector<256x32xf32>
    %221 = vector.broadcast %219 : vector<1x32xf32> to vector<256x32xf32>
    %222 = arith.mulf %220, %221 : vector<256x32xf32>
    %223 = vector.extract_strided_slice %75 {offsets = [1, 0], sizes = [1, 32], strides = [1, 1]} : vector<2x32xf32> to vector<1x32xf32>
    %224 = vector.broadcast %163 : vector<256x1xf32> to vector<256x32xf32>
    %225 = vector.broadcast %223 : vector<1x32xf32> to vector<256x32xf32>
    %226 = arith.mulf %224, %225 : vector<256x32xf32>
    %227 = arith.addf %222, %226 : vector<256x32xf32>
    %228 = vector.extract_strided_slice %76 {offsets = [1, 0], sizes = [1, 32], strides = [1, 1]} : vector<2x32xf32> to vector<1x32xf32>
    %229 = vector.broadcast %228 : vector<1x32xf32> to vector<256x32xf32>
    %230 = arith.addf %227, %229 : vector<256x32xf32>
    %231 = math.tanh %230 : vector<256x32xf32>
    %232 = vector.extract_strided_slice %43 {offsets = [128, 0], sizes = [32, 16], strides = [1, 1]} : vector<160x16xf32> to vector<32x16xf32>
    %233 = vector.extract_strided_slice %77 {offsets = [4, 0], sizes = [1, 16], strides = [1, 1]} : vector<5x16xf32> to vector<1x16xf32>
    %cst_92 = arith.constant dense<0.000000e+00> : vector<16x32xf32>
    %234 = tpu.matmul %164, %231, %cst_92 {dimension_numbers = #tpu.dot_dimension_numbers<[1], [0], [0], [1], [0, 0, 1, 1], [], []>} : vector<16x256xf32>, vector<256x32xf32>, vector<16x32xf32> -> vector<16x32xf32>
    %cst_93 = arith.constant dense<0.000000e+00> : vector<16x16xf32>
    %235 = tpu.matmul %234, %232, %cst_93 {dimension_numbers = #tpu.dot_dimension_numbers<[1], [0], [0], [1], [0, 0, 1, 1], [], []>} : vector<16x32xf32>, vector<32x16xf32>, vector<16x16xf32> -> vector<16x16xf32>
    %236 = vector.broadcast %233 : vector<1x16xf32> to vector<16x16xf32>
    %237 = arith.addf %235, %236 : vector<16x16xf32>
    %cst_94 = arith.constant dense<0.000000e+00> : vector<16x32xf32>
    %238 = tpu.matmul %165, %231, %cst_94 {dimension_numbers = #tpu.dot_dimension_numbers<[1], [0], [0], [1], [0, 0, 1, 1], [], []>} : vector<16x256xf32>, vector<256x32xf32>, vector<16x32xf32> -> vector<16x32xf32>
    %cst_95 = arith.constant dense<0.000000e+00> : vector<16x16xf32>
    %239 = tpu.matmul %238, %232, %cst_95 {dimension_numbers = #tpu.dot_dimension_numbers<[1], [0], [0], [1], [0, 0, 1, 1], [], []>} : vector<16x32xf32>, vector<32x16xf32>, vector<16x16xf32> -> vector<16x16xf32>
    %240 = vector.broadcast %233 : vector<1x16xf32> to vector<16x16xf32>
    %241 = arith.addf %239, %240 : vector<16x16xf32>
    %c16 = arith.constant 16 : index
    %c0_96 = arith.constant 0 : index
    %242 = vector.load %arg28[%c16, %c0_96] : memref<32x16xf32, #tpu.memory_space<vmem>>, vector<16x16xf32>
    tpu.vector_store %arg28[%c16, %c0_96], %237 {strides = array<i32>} : memref<32x16xf32, #tpu.memory_space<vmem>>, vector<16x16xf32>,
    %c16_97 = arith.constant 16 : index
    %c0_98 = arith.constant 0 : index
    %243 = vector.load %arg29[%c16_97, %c0_98] : memref<32x16xf32, #tpu.memory_space<vmem>>, vector<16x16xf32>
    tpu.vector_store %arg29[%c16_97, %c0_98], %241 {strides = array<i32>} : memref<32x16xf32, #tpu.memory_space<vmem>>, vector<16x16xf32>,
    %c16_99 = arith.constant 16 : index
    %c0_100 = arith.constant 0 : index
    %244 = vector.load %arg23[%c16_99, %c0_100] : memref<32x16xf32, #tpu.memory_space<vmem>>, vector<16x16xf32>
    %245 = arith.mulf %244, %237 : vector<16x16xf32>
    %246 = vector.shape_cast %245 : vector<16x16xf32> to vector<1x16x16xf32>
    %cst_101 = arith.constant dense<0.000000e+00> : vector<1xf32>
    %247 = vector.multi_reduction <add>, %246, %cst_101 [1, 2] : vector<1x16x16xf32> to vector<1xf32>
    %248 = vector.shape_cast %247 : vector<1xf32> to vector<1x1x1xf32>
    %249 = vector.extract %248[0, 0, 0] : f32 from vector<1x1x1xf32>
    %250 = arith.mulf %237, %237 : vector<16x16xf32>
    %251 = vector.shape_cast %250 : vector<16x16xf32> to vector<1x16x16xf32>
    %cst_102 = arith.constant dense<0.000000e+00> : vector<1xf32>
    %252 = vector.multi_reduction <add>, %251, %cst_102 [1, 2] : vector<1x16x16xf32> to vector<1xf32>
    %253 = vector.shape_cast %252 : vector<1xf32> to vector<1x1x1xf32>
    %254 = vector.extract %253[0, 0, 0] : f32 from vector<1x1x1xf32>
    %cst_103 = arith.constant 5.000000e-01 : f32
    %255 = arith.mulf %cst_103, %254 : f32
    %256 = arith.addf %249, %255 : f32
    %257 = arith.addf %218, %256 : f32
    %c16_104 = arith.constant 16 : index
    %c0_105 = arith.constant 0 : index
    %258 = vector.load %arg24[%c16_104, %c0_105] : memref<32x16xf32, #tpu.memory_space<vmem>>, vector<16x16xf32>
    %259 = arith.mulf %258, %241 : vector<16x16xf32>
    %260 = vector.shape_cast %259 : vector<16x16xf32> to vector<1x16x16xf32>
    %cst_106 = arith.constant dense<0.000000e+00> : vector<1xf32>
    %261 = vector.multi_reduction <add>, %260, %cst_106 [1, 2] : vector<1x16x16xf32> to vector<1xf32>
    %262 = vector.shape_cast %261 : vector<1xf32> to vector<1x1x1xf32>
    %263 = vector.extract %262[0, 0, 0] : f32 from vector<1x1x1xf32>
    %264 = arith.mulf %241, %241 : vector<16x16xf32>
    %265 = vector.shape_cast %264 : vector<16x16xf32> to vector<1x16x16xf32>
    %cst_107 = arith.constant dense<0.000000e+00> : vector<1xf32>
    %266 = vector.multi_reduction <add>, %265, %cst_107 [1, 2] : vector<1x16x16xf32> to vector<1xf32>
    %267 = vector.shape_cast %266 : vector<1xf32> to vector<1x1x1xf32>
    %268 = vector.extract %267[0, 0, 0] : f32 from vector<1x1x1xf32>
    %cst_108 = arith.constant 5.000000e-01 : f32
    %269 = arith.mulf %cst_108, %268 : f32
    %270 = arith.addf %263, %269 : f32
    %271 = arith.addf %257, %270 : f32
    %272 = arith.subf %0, %68 : vector<8x16xf32>
    %cst_109 = arith.constant 1.000000e+00 : f32
    %273 = vector.broadcast %cst_109 : f32 to vector<8x16xf32>
    %274 = arith.mulf %272, %273 : vector<8x16xf32>
    %cst_110 = arith.constant 5.000000e-01 : f32
    %275 = vector.broadcast %cst_110 : f32 to vector<8x16xf32>
    %276 = arith.mulf %275, %274 : vector<8x16xf32>
    %277 = arith.mulf %276, %274 : vector<8x16xf32>
    %cst_111 = arith.constant 0.918938517 : f32
    %278 = vector.broadcast %cst_111 : f32 to vector<8x16xf32>
    %279 = arith.addf %277, %278 : vector<8x16xf32>
    %280 = vector.shape_cast %279 : vector<8x16xf32> to vector<1x8x16xf32>
    %cst_112 = arith.constant dense<0.000000e+00> : vector<1xf32>
    %281 = vector.multi_reduction <add>, %280, %cst_112 [1, 2] : vector<1x8x16xf32> to vector<1xf32>
    %282 = vector.shape_cast %281 : vector<1xf32> to vector<1x1x1xf32>
    %283 = vector.extract %282[0, 0, 0] : f32 from vector<1x1x1xf32>
    %284 = arith.mulf %26, %26 : vector<8x1xf32>
    %285 = arith.mulf %39, %39 : vector<8x1xf32>
    %286 = arith.addf %284, %285 : vector<8x1xf32>
    %287 = math.log %39 : vector<8x1xf32>
    %cst_113 = arith.constant 2.000000e+00 : f32
    %288 = vector.broadcast %cst_113 : f32 to vector<8x1xf32>
    %289 = arith.mulf %288, %287 : vector<8x1xf32>
    %290 = arith.subf %286, %289 : vector<8x1xf32>
    %cst_114 = arith.constant 1.000000e+00 : f32
    %291 = vector.broadcast %cst_114 : f32 to vector<8x1xf32>
    %292 = arith.subf %290, %291 : vector<8x1xf32>
    %293 = vector.shape_cast %292 : vector<8x1xf32> to vector<1x8x1xf32>
    %cst_115 = arith.constant dense<0.000000e+00> : vector<1xf32>
    %294 = vector.multi_reduction <add>, %293, %cst_115 [1, 2] : vector<1x8x1xf32> to vector<1xf32>
    %295 = vector.shape_cast %294 : vector<1xf32> to vector<1x1x1xf32>
    %296 = vector.extract %295[0, 0, 0] : f32 from vector<1x1x1xf32>
    %cst_116 = arith.constant 5.000000e-01 : f32
    %297 = arith.mulf %cst_116, %296 : f32
    %cst_117 = arith.constant 1.000000e+00 : f32
    %298 = arith.mulf %cst_117, %297 : f32
    %299 = arith.addf %283, %298 : f32
    %cst_118 = arith.constant 1.000000e+00 : f32
    %300 = arith.mulf %cst_118, %299 : f32
    %301 = arith.addf %300, %271 : f32
    %c0_119 = arith.constant 0 : index
    %c0_120 = arith.constant 0 : index
    %302 = memref.load %arg25[%c0_119, %c0_120] : memref<1x1xf32, #tpu.memory_space<smem>>
    memref.store %301, %arg25[%c0_119, %c0_120] : memref<1x1xf32, #tpu.memory_space<smem>>
    return
  }
}

</mosaic_0001>

<bundles_post_ra>
// kernel: cvae_forward.1
= control target key start
LH: loop header
LB: loop body
LE: loop exit
PB: predicated region body
PF: predicated region fallthrough
CT: control target
= control target key end

     0   :  { %s2209_s6 = smov 1   ;;  %s2210_s10 = smov 2   ;;  %s3368_s0 = inlined_call_operand.smem [shape: u32[30], index: -1, kind: input, shape index: {}] }
   0x1   :  { %s2254_s5 = sld [smem:[%s3368_s0]]   ;;  %s2211_s14 = smov 3  }
   0x2   :  { %s2259_s9 = sld [smem:[%s3368_s0 + %s2209_s6]]   ;;  %s2212_s18 = smov 4  }
   0x3   :  { %s2264_s13 = sld [smem:[%s3368_s0 + %s2210_s10]]   ;;  %s2213_s22 = smov 5  }
   0x4   :  { %s2269_s17 = sld [smem:[%s3368_s0 + %s2211_s14]]   ;;  %s2214_s26 = smov 6  }
   0x5   :  { %s2274_s21 = sld [smem:[%s3368_s0 + %s2212_s18]]   ;;  %s2215_s30 = smov 7  }
   0x6   :  { %s2279_s25 = sld [smem:[%s3368_s0 + %s2213_s22]]   ;;  %s2216_s4 = smov 8  }
   0x7   :  { %s2284_s29 = sld [smem:[%s3368_s0 + %s2214_s26]]   ;;  %s2217_s10 = smov 9  }
   0x8   :  { %s2289_s3 = sld [smem:[%s3368_s0 + %s2215_s30]]   ;;  %s2218_s15 = smov 10  }
   0x9   :  { %s2294_s8 = sld [smem:[%s3368_s0 + %s2216_s4]]   ;;  %s2219_s20 = smov 11  }
   0xa   :  { %s2299_s14 = sld [smem:[%s3368_s0 + %s2217_s10]]   ;;  %s2220_s26 = smov 12  }
   0xb   :  { %s2304_s19 = sld [smem:[%s3368_s0 + %s2218_s15]]   ;;  %s2221_s1 = smov 13  }
   0xc   :  { %s2309_s24 = sld [smem:[%s3368_s0 + %s2219_s20]]   ;;  %s2222_s7 = smov 14  }
   0xd   :  { %s2314_s30 = sld [smem:[%s3368_s0 + %s2220_s26]]   ;;  %s2223_s15 = smov 15  }
   0xe   :  { %3397 = sst [smem:[#allocation11_spill]] %s2289_s3  ;;  %s2224_s22 = smov 16  }
   0xf   :  { %3398 = sst [smem:[#allocation12_spill]] %s2294_s8  ;;  %s2225_s28 = smov 17  }
  0x10   :  { %s2319_s6 = sld [smem:[%s3368_s0 + %s2221_s1]]  }
  0x11   :  { %s2324_s12 = sld [smem:[%s3368_s0 + %s2222_s7]]   ;;  %s2226_s7 = smov 18  }
  0x12   :  { %s2329_s20 = sld [smem:[%s3368_s0 + %s2223_s15]]   ;;  %s2227_s15 = smov 19  }
  0x13   :  { %s2334_s27 = sld [smem:[%s3368_s0 + %s2224_s22]]   ;;  %s2228_s22 = smov 20  }
  0x14   :  { %s2339_s4 = sld [smem:[%s3368_s0 + %s2225_s28]]   ;;  %s2229_s28 = smov 21  }
  0x15   :  { %s2359_s8 = sld [smem:[%s3368_s0 + %s2229_s28]]   ;;  %s2233_s28 = smov 25  }
  0x17   :  { %3399 = sst [smem:[#allocation13_spill]] %s2324_s12 }
  0x18   :  { %3400 = sst [smem:[#allocation14_spill]] %s2329_s20 }
  0x19   :  { %3401 = sst [smem:[#allocation15_spill]] %s2334_s27 }
  0x1a   :  { %s2344_s12 = sld [smem:[%s3368_s0 + %s2226_s7]]   ;;  %s2230_s7 = smov 22  }
  0x1b   :  { %s2349_s20 = sld [smem:[%s3368_s0 + %s2227_s15]]   ;;  %s2231_s15 = smov 23  }
  0x1c   :  { %s2354_s27 = sld [smem:[%s3368_s0 + %s2228_s22]]   ;;  %s2232_s22 = smov 24  }
  0x1d   :  { %3404 = sst [smem:[#allocation18_spill]] %s2359_s8 }
  0x1e   :  { %s2364_s3 = sld [smem:[%s3368_s0 + %s2230_s7]]   ;;  %s2234_s7 = smov 26  }
  0x1f   :  { %s2379_s8 = sld [smem:[%s3368_s0 + %s2233_s28]]   ;;  %s2237_s28 = smov 29  }
  0x21   :  { %3402 = sst [smem:[#allocation16_spill]] %s2349_s20 }
  0x22   :  { %3403 = sst [smem:[#allocation17_spill]] %s2354_s27 }
  0x23   :  { %s2369_s20 = sld [smem:[%s3368_s0 + %s2231_s15]]   ;;  %s2235_s15 = smov 27  }
  0x24   :  { %3405 = sst [smem:[#allocation19_spill]] %s2364_s3 }
  0x25   :  { %s2374_s27 = sld [smem:[%s3368_s0 + %s2232_s22]]   ;;  %s2236_s22 = smov 28  }
  0x26   :  { %3408 = sst [smem:[#allocation22_spill]] %s2379_s8 }
  0x27   :  { %s2384_s3 = sld [smem:[%s3368_s0 + %s2234_s7]]  }
  0x28   :  { %s2399_s8 = sld [smem:[%s3368_s0 + %s2237_s28]]  }
  0x29   :  { %3406 = sst [smem:[#allocation20_spill]] %s2369_s20 }
  0x2a   :  { %s2389_s20 = sld [smem:[%s3368_s0 + %s2235_s15]]  }
  0x2b   :  { %3407 = sst [smem:[#allocation21_spill]] %s2374_s27 }
  0x2c   :  { %s2394_s27 = sld [smem:[%s3368_s0 + %s2236_s22]]  }
  0x2d   :  { %65 = vsyncpa [#allocation4], 0 }
  0x2e   :  { %66 = vsyncpa [#allocation3], 0  ;;  %v121_v0 = vld [vmem:[%s2299_s14 + $0x8] sm:$0xff]  ;;  %v2238_v3 = vmov 1   ;;  %v2239_v4 = vmov 0   ;;  %v119_v5 = vld [vmem:[%s2259_s9] sm:$0xff] }
  0x2f   :  { %v430_v1 = vld [vmem:[%s2274_s21 + $0x8] sm:$0xff]  ;;  %1979 = vset.pattern.permute.xlu0 %v2238_v3  ;;  %1982 = vset.pattern.permute.xlu2 %v2239_v4  ;;  %v120_v6 = vld [vmem:[%s2299_s14] sm:$0xff]  ;;  %vm126_vm0 = vcmask 130048  }
  0x30   :  { %v337_v2 = vld [vmem:[%s2269_s17 + $0x8] sm:$0xff]  ;;  %1981 = vset.pattern.permute.xlu1 %v2239_v4  ;;  %144 = vmatpush.msra.mxu0 %v121_v0  ;;  %v118_v7 = vld [vmem:[%s2254_s5] sm:$0xff] }
  0x31   :  { %438 = vperm.xlu2 %1982, %v430_v1   ;;  %345 = vperm.xlu1 %1981, %v337_v2  }
  0x32   :  { %160 = vperm.xlu0 %1979, %v119_v5   ;;  %145 = vmatpush.msra.mxu0 %v120_v6 }
  0x33   :  { %1892 = vmatmul.msk.f32.vlgmr.msra.gmra.mxu0 %vm126_vm0, %v118_v7 }
  0x34   :  { %67 = vsyncpa [#allocation7], 0  ;;  %v429_v8 = vld [vmem:[%s2274_s21] sm:$0xff]  ;;  %v633_v10 = vld [vmem:[%s2279_s25 + $0xf8] sm:$0xff]  ;;  %vm175_vm1 = vcmask 261120   ;;  %s2241_s0 = smov 1  }
  0x35   :  { %v336_v9 = vld [vmem:[%s2269_s17] sm:$0xff]  ;;  %v617_v11 = vld [vmem:[%s2279_s25 + $0x78] sm:$0xff]  ;;  %v616_v13 = vld [vmem:[%s2279_s25 + $0x70] sm:$0xff]  ;;  %s3443_s9 = sld [smem:[#allocation11_spill]]  ;;  %vm402_vm2 = vcmask 122880   ;;  %vm1792_vm3 = vcmask 7168  }
  0x36   :  { %v649_v12 = vld [vmem:[%s2284_s29 + $0x78] sm:$0xff]  ;;  %v664_v15 = vld [vmem:[%s2284_s29 + $0xf0] sm:$0xff]  ;;  %v647_v18 = vld [vmem:[%s2284_s29 + $0x68] sm:$0xff]  ;;  %s3444_s17 = sld [smem:[#allocation16_spill]]  ;;  %s2159_s10 = scalar_lea.hbm %s2384_s3, 1 }
  0x37   :  { %v665_v14 = vld [vmem:[%s2284_s29 + $0xf8] sm:$0xff]  ;;  %v648_v16 = vld [vmem:[%s2284_s29 + $0x70] sm:$0xff]  ;;  %v631_v19 = vld [vmem:[%s2279_s25 + $0xe8] sm:$0xff]  ;;  %s3446_s21 = sld [smem:[#allocation12_spill]] }
  0x38   :  { %v632_v17 = vld [vmem:[%s2279_s25 + $0xf0] sm:$0xff]  ;;  %v615_v20 = vld [vmem:[%s2279_s25 + $0x68] sm:$0xff]  ;;  %v630_v21 = vld [vmem:[%s2279_s25 + $0xe0] sm:$0xff]  ;;  %s3465_s14 = sld [smem:[#allocation13_spill]] }
  0x39   :  { %433 = vperm.xlu2 %1982, %v429_v8   ;;  %340 = vperm.xlu1 %1981, %v336_v9   ;;  %v614_v22 = vld [vmem:[%s2279_s25 + $0x60] sm:$0xff]  ;;  %v663_v23 = vld [vmem:[%s2284_s29 + $0xe8] sm:$0xff]  ;;  %v613_v24 = vld [vmem:[%s2279_s25 + $0x58] sm:$0xff] }
  0x3a   :  { %1980 = vset.pattern.permute.xlu0 %v2239_v4  ;;  %v662_v25 = vld [vmem:[%s2284_s29 + $0xe0] sm:$0xff]  ;;  %v661_v27 = vld [vmem:[%s2284_s29 + $0xd8] sm:$0xff]  ;;  %v644_v30 = vld [vmem:[%s2284_s29 + $0x50] sm:$0xff] }
  0x3b   :  { %153 = vperm.xlu0 %1980, %v119_v5   ;;  %v646_v26 = vld [vmem:[%s2284_s29 + $0x60] sm:$0xff]  ;;  %v645_v28 = vld [vmem:[%s2284_s29 + $0x58] sm:$0xff]  ;;  %v628_v31 = vld [vmem:[%s2279_s25 + $0xd0] sm:$0xff] }
  0x3c   :  { %v629_v29 = vld [vmem:[%s2279_s25 + $0xd8] sm:$0xff]  ;;  %v612_v32 = vld [vmem:[%s2279_s25 + $0x50] sm:$0xff]  ;;  %v627_v33 = vld [vmem:[%s2279_s25 + $0xc8] sm:$0xff] }
  0x3d   :  { %v611_v34 = vld [vmem:[%s2279_s25 + $0x48] sm:$0xff]  ;;  %v660_v35 = vld [vmem:[%s2284_s29 + $0xd0] sm:$0xff]  ;;  %v610_v36 = vld [vmem:[%s2279_s25 + $0x40] sm:$0xff] }
  0x3e   :  { %v659_v37 = vld [vmem:[%s2284_s29 + $0xc8] sm:$0xff]  ;;  %v2440_v39 = vld [vmem:[%s2339_s4] sm:$0xff]  ;;  %v641_v48 = vld [vmem:[%s2284_s29 + $0x38] sm:$0xff] }
  0x3f   :  { %v643_v38 = vld [vmem:[%s2284_s29 + $0x48] sm:$0xff]  ;;  %v658_v40 = vld [vmem:[%s2284_s29 + $0xc0] sm:$0xff]  ;;  %v522_v41 = vperm.slane %v2440_v39, 3  ;;  %v525_v42 = vperm.slane %v2440_v39, 5  ;;  %v625_v52 = vld [vmem:[%s2279_s25 + $0xb8] sm:$0xff]  ;;  %v348_v63 = vperm.slane %v2440_v39, 0 }
  0x40   :  { %v642_v46 = vld [vmem:[%s2284_s29 + $0x40] sm:$0xff]  ;;  %v609_v53 = vld [vmem:[%s2279_s25 + $0x38] sm:$0xff]  ;;  %v624_v54 = vld [vmem:[%s2279_s25 + $0xb0] sm:$0xff]  ;;  %v351_v0 = vperm.slane %v2440_v39, 1  ;;  %v2480_v9 = vperm.slane %v2440_v39, 7 }
  0x41   :  { %831 = vperm.xlu2 %1982, %v633_v10   ;;  %751 = vperm.xlu1 %1981, %v617_v11   ;;  %v626_v47 = vld [vmem:[%s2279_s25 + $0xc0] sm:$0xff]  ;;  %v170_v55 = vld [vmem:[%s2314_s30 + $0x18] sm:$0xff]  ;;  %v169_v56 = vld [vmem:[%s2314_s30 + $0x10] sm:$0xff] }
  0x42   :  { %191 = vmatpush.msra.mxu1 %v170_v55  ;;  %v168_v58 = vld [vmem:[%s2314_s30 + $0x8] sm:$0xff]  ;;  %v608_v59 = vld [vmem:[%s2279_s25 + $0x30] sm:$0xff]  ;;  %v657_v60 = vld [vmem:[%s2284_s29 + $0xb8] sm:$0xff] }
  0x43   :  { %944 = vperm.xlu0 %1980, %v649_v12   ;;  %v167_v61 = vld [vmem:[%s2314_s30] sm:$0xff]  ;;  %v607_v62 = vld [vmem:[%s2279_s25 + $0x28] sm:$0xff]  ;;  %v656_v6 = vld [vmem:[%s2284_s29 + $0xb0] sm:$0xff]  ;;  %s3484_s30 = sld [smem:[#allocation20_spill]] }
  0x44   :  { %192 = vmatpush.msra.mxu1 %v169_v56  ;;  %v640_v7 = vld [vmem:[%s2284_s29 + $0x30] sm:$0xff]  ;;  %v2477_v8 = vld [vmem:[%s2339_s4 + $0x8] sm:$0xf]  ;;  %v150_v12 = vld [vmem:[%s2304_s19] sm:$0x3]  ;;  %s3466_s19 = sld [smem:[#allocation15_spill]] }
  0x45   :  { %v655_v10 = vld [vmem:[%s2284_s29 + $0xa8] sm:$0xff]  ;;  %v622_v56 = vld [vmem:[%s2279_s25 + $0xa0] sm:$0xff] }
  0x46   :  { %193 = vmatpush.msra.mxu1 %v168_v58  ;;  %v606_v58 = vld [vmem:[%s2279_s25 + $0x20] sm:$0xff] }
  0x48   :  { %194 = vmatpush.msra.mxu1 %v167_v61 }
  0x49   :  { %746 = vperm.xlu2 %1982, %v616_v13   ;;  %1024 = vperm.xlu1 %1981, %v665_v14   ;;  %v2486_v13 = vperm.slane %v2477_v8, 1 }
  0x4b   :  { %1019 = vperm.xlu0 %1980, %v664_v15  }
  0x51   :  { %939 = vperm.xlu2 %1982, %v648_v16   ;;  %826 = vperm.xlu1 %1981, %v632_v17   ;;  %v156_v16 = vperm.slane %v150_v12, 0 }
  0x53   :  { %934 = vperm.xlu0 %1980, %v647_v18  }
  0x59   :  { %821 = vperm.xlu2 %1982, %v631_v19   ;;  %741 = vperm.xlu1 %1981, %v615_v20   ;;  %v441_v19 = vperm.slane %v2440_v39, 2  ;;  %v2491_v20 = vperm.slane %v2440_v39, 6 }
  0x5b   :  { %816 = vperm.xlu0 %1980, %v630_v21   ;;  %v2494_v21 = vperm.slane %v2477_v8, 0 }
  0x61   :  { %736 = vperm.xlu2 %1982, %v614_v22   ;;  %1014 = vperm.xlu1 %1981, %v663_v23   ;;  %v1983_v23 = vld [vmem:[%s2309_s24] ss:$0 sm:$0xff]  ;;  %s3467_s24 = sld [smem:[#allocation19_spill]] }
  0x63   :  { %731 = vperm.xlu0 %1980, %v613_v24  }
  0x69   :  { %1009 = vperm.xlu2 %1982, %v662_v25   ;;  %929 = vperm.xlu1 %1981, %v646_v26  }
  0x6b   :  { %1004 = vperm.xlu0 %1980, %v661_v27   ;;  %v639_v27 = vld [vmem:[%s2284_s29 + $0x28] sm:$0xff] }
  0x71   :  { %924 = vperm.xlu2 %1982, %v645_v28   ;;  %811 = vperm.xlu1 %1981, %v629_v29   ;;  %v623_v28 = vld [vmem:[%s2279_s25 + $0xa8] sm:$0xff] }
  0x73   :  { %919 = vperm.xlu0 %1980, %v644_v30   ;;  %v163_v30 = vperm.slane %v150_v12, 1 }
  0x79   :  { %806 = vperm.xlu2 %1982, %v628_v31   ;;  %726 = vperm.xlu1 %1981, %v612_v32  }
  0x7b   :  { %801 = vperm.xlu0 %1980, %v627_v33  }
  0x81   :  { %721 = vperm.xlu2 %1982, %v611_v34   ;;  %999 = vperm.xlu1 %1981, %v660_v35   ;;  %v638_v34 = vld [vmem:[%s2284_s29 + $0x20] sm:$0xff] }
  0x83   :  { %716 = vperm.xlu0 %1980, %v610_v36   ;;  %v444_v36 = vperm.slane %v2440_v39, 4 }
  0x89   :  { %994 = vperm.xlu2 %1982, %v659_v37   ;;  %914 = vperm.xlu1 %1981, %v643_v38  }
  0x8b   :  { %989 = vperm.xlu0 %1980, %v658_v40   ;;  %v2445_v43 = vpop.permute.xlu2 %438 }
  0x8c   :  { %v524_v44 = vmul.f32 %v522_v41, %v2445_v43  ;;  %v443_v35 = vmul.f32 %v441_v19, %v2445_v43  ;;  %v2514_v43 = vperm.slane %v2477_v8, 2 }
  0x8e   :  { %v2448_v45 = vadd.f32 %v525_v42, %v524_v44 }
  0x91   :  { %909 = vperm.xlu2 %1982, %v642_v46   ;;  %796 = vperm.xlu1 %1981, %v626_v47  }
  0x93   :  { %904 = vperm.xlu0 %1980, %v641_v48   ;;  %v2453_v49 = vpop.permute.xlu2 %433 }
  0x94   :  { %v523_v50 = vmul.f32 %v522_v41, %v2453_v49  ;;  %v442_v37 = vmul.f32 %v441_v19, %v2453_v49  ;;  %v654_v19 = vld [vmem:[%s2284_s29 + $0xa0] sm:$0xff] }
  0x96   :  { %v2456_v51 = vadd.f32 %v525_v42, %v523_v50  ;;  %v445_v48 = vadd.f32 %v444_v36, %v442_v37 }
  0x99   :  { %791 = vperm.xlu2 %1982, %v625_v52   ;;  %711 = vperm.xlu1 %1981, %v609_v53   ;;  %v446_v52 = vadd.f32 %v444_v36, %v443_v35 }
  0x9b   :  { %786 = vperm.xlu0 %1980, %v624_v54   ;;  %v2463_v57 = vpop.permute.xlu2 %831 }
  0xa1   :  { %706 = vperm.xlu2 %1982, %v608_v59   ;;  %984 = vperm.xlu1 %1981, %v657_v60   ;;  %v227_v60 = vld [vmem:[%s2344_s12 + $0x38] sm:$0xff] }
  0xa3   :  { %701 = vperm.xlu0 %1980, %v607_v62   ;;  %v747_v1 = vpop.permute.xlu2 %746  ;;  %v346_v2 = vpop.permute.xlu1 %345 }
  0xa4   :  { %v350_v3 = vmul.f32 %v348_v63, %v346_v2  ;;  %v2472_v4 = vpop.permute.xlu0 %160  ;;  %v1393_v11 = vmul.f32 %v2480_v9, %v747_v1  ;;  %v849_v29 = vmul.f32 %v2491_v20, %v747_v1  ;;  %v226_v1 = vld [vmem:[%s2344_s12 + $0x30] sm:$0xff]  ;;  %v866_v2 = vmul.f32 %v2491_v20, %v2463_v57 }
  0xa5   :  { %3409 = vst [vmem:[#allocation23_spill] sm:$0xff] %v2472_v4  ;;  %v164_v40 = vmul.f32 %v163_v30, %v2472_v4 }
  0xa6   :  { %v353_v5 = vadd.f32 %v351_v0, %v350_v3 }
  0xa8   :  { %1986 = vtanh.f32 %v353_v5  ;;  %v1410_v5 = vmul.f32 %v2480_v9, %v2463_v57 }
  0xa9   :  { %979 = vperm.xlu2 %1982, %v656_v6   ;;  %899 = vperm.xlu1 %1981, %v640_v7  }
  0xab   :  { %974 = vperm.xlu0 %1980, %v655_v10   ;;  %v940_v14 = vpop.permute.xlu2 %939  ;;  %v341_v15 = vpop.permute.xlu1 %340  ;;  %v225_v10 = vld [vmem:[%s2344_s12 + $0x28] sm:$0xff] }
  0xac   :  { %v1426_v17 = vmul.f32 %v2486_v13, %v940_v14  ;;  %v349_v18 = vmul.f32 %v348_v63, %v341_v15  ;;  %v1042_v31 = vmul.f32 %v2494_v21, %v940_v14  ;;  %v3375_v63 = vmov 0.0625  }
  0xad   :  { %v2496_v22 = vpop.permute.xlu0 %153 }
  0xae   :  { %3410 = vst [vmem:[#allocation24_spill] sm:$0xff] %v2496_v22  ;;  %v1987_v24 = vpop.eup %1986  ;;  %v2499_v25 = vadd.f32 %v1426_v17, %v1393_v11  ;;  %v352_v26 = vadd.f32 %v351_v0, %v349_v18  ;;  %v157_v32 = vmul.f32 %v156_v16, %v2496_v22  ;;  %v1074_v41 = vadd.f32 %v1042_v31, %v849_v29  ;;  %v621_v0 = vld [vmem:[%s2279_s25 + $0x98] sm:$0xff]  ;;  %v224_v16 = vld [vmem:[%s2344_s12 + $0x20] sm:$0xff] }
  0xaf   :  { %373 = vmatpush.msrb.mxu0 %v1987_v24  ;;  %v605_v18 = vld [vmem:[%s2279_s25 + $0x18] sm:$0xff] }
  0xb0   :  { %1988 = vtanh.f32 %v352_v26  ;;  %v147_v33 = vpop.f32.mrf.mxu0  ;;  %v1107_v59 = vadd.f32 %v2514_v43, %v1074_v41  ;;  %v604_v26 = vld [vmem:[%s2279_s25 + $0x10] sm:$0xff] }
  0xb1   :  { %v148_v38 = vadd.f32 %v1983_v23, %v147_v33  ;;  %894 = vperm.xlu2 %1982, %v639_v27   ;;  %781 = vperm.xlu1 %1981, %v623_v28   ;;  %v652_v41 = vld [vmem:[%s2284_s29 + $0x90] sm:$0xff] }
  0xb3   :  { %v158_v42 = vadd.f32 %v157_v32, %v148_v38  ;;  %889 = vperm.xlu0 %1980, %v638_v34   ;;  %v2511_v44 = vpop.permute.xlu2 %821  ;;  %v752_v46 = vpop.permute.xlu1 %751  ;;  %v653_v38 = vld [vmem:[%s2284_s29 + $0x98] sm:$0xff] }
  0xb4   :  { %v850_v39 = vmul.f32 %v2491_v20, %v752_v46  ;;  %v1394_v47 = vmul.f32 %v2480_v9, %v752_v46 }
  0xb5   :  { %v165_v49 = vadd.f32 %v164_v40, %v158_v42  ;;  %v945_v50 = vpop.permute.xlu0 %944  ;;  %v637_v40 = vld [vmem:[%s2284_s29 + $0x18] sm:$0xff] }
  0xb6   :  { %v1989_v53 = vpop.eup %1988  ;;  %v1043_v54 = vmul.f32 %v2494_v21, %v945_v50  ;;  %v1427_v55 = vmul.f32 %v2486_v13, %v945_v50 }
  0xb7   :  { %1990 = vtanh.f32 %v165_v49  ;;  %374 = vmatpush.msrb.mxu0 %v1989_v53 }
  0xb8   :  { %v1075_v61 = vadd.f32 %v1043_v54, %v850_v39  ;;  %v2524_v62 = vadd.f32 %v1427_v55, %v1394_v47  ;;  %1895 = vmatmul.msk.f32.vlgmr.msrb.gmra.mxu0 %vm126_vm0, %v3375_v63  ;;  %1992 = vtanh.f32 %v446_v52 }
  0xb9   :  { %1994 = vtanh.f32 %v445_v48  ;;  %776 = vperm.xlu2 %1982, %v622_v56   ;;  %696 = vperm.xlu1 %1981, %v606_v58  }
  0xba   :  { %v1108_v3 = vadd.f32 %v2514_v43, %v1075_v61  ;;  %487 = vmatpush.msra.mxu0 %v227_v60  ;;  %1996 = vtanh.f32 %v1107_v59  ;;  %v636_v59 = vld [vmem:[%s2284_s29 + $0x10] sm:$0xff] }
  0xbb   :  { %771 = vperm.xlu0 %1980, %v621_v0   ;;  %v2535_v6 = vpop.permute.xlu2 %736  ;;  %v1025_v7 = vpop.permute.xlu1 %1024  ;;  %v620_v60 = vld [vmem:[%s2279_s25 + $0x90] sm:$0xff] }
  0xbc   :  { %1998 = vtanh.f32 %v1108_v3  ;;  %v1059_v11 = vmul.f32 %v2494_v21, %v1025_v7  ;;  %488 = vmatpush.msra.mxu0 %v226_v1  ;;  %v1443_v14 = vmul.f32 %v2486_v13, %v1025_v7  ;;  %v864_v3 = vmul.f32 %v2491_v20, %v2511_v44 }
  0xbd   :  { %v1991_v12 = vpop.eup %1990  ;;  %v1020_v15 = vpop.permute.xlu0 %1019 }
  0xbe   :  { %v1993_v57 = vpop.eup %1992  ;;  %v2541_v17 = vadd.f32 %v1059_v11, %v866_v2  ;;  %1893 = vmatmul.msk.f32.vlgmr.msra.gmra.mxu1 %vm175_vm1, %v1991_v12  ;;  %489 = vmatpush.msra.mxu0 %v225_v10  ;;  %v2546_v24 = vadd.f32 %v1443_v14, %v1410_v5  ;;  %v1058_v31 = vmul.f32 %v2494_v21, %v1020_v15  ;;  %v635_v2 = vld [vmem:[%s2284_s29 + $0x8] sm:$0xff] }
  0xbf   :  { %v1995_v23 = vpop.eup %1994  ;;  %463 = vmatpush.msra.mxu3 %v1993_v57  ;;  %v1442_v32 = vmul.f32 %v2486_v13, %v1020_v15  ;;  %v1408_v5 = vmul.f32 %v2480_v9, %v2511_v44 }
  0xc0   :  { %3411 = vst [vmem:[#allocation25_spill] sm:$0xff] %v2546_v24  ;;  %490 = vmatpush.msra.mxu0 %v224_v16  ;;  %v2549_v27 = vpop.eup %1996 }
  0xc1   :  { %3412 = vst [vmem:[#allocation26_spill] sm:$0xff] %v2549_v27  ;;  %691 = vperm.xlu2 %1982, %v605_v18   ;;  %969 = vperm.xlu1 %1981, %v654_v19   ;;  %v619_v18 = vld [vmem:[%s2279_s25 + $0x88] sm:$0xff] }
  0xc2   :  { %v2551_v28 = vpop.eup %1998  ;;  %464 = vmatpush.msra.mxu3 %v1995_v23  ;;  %v603_v19 = vld [vmem:[%s2279_s25 + $0x8] sm:$0xff] }
  0xc3   :  { %3413 = vst [vmem:[#allocation27_spill] sm:$0xff] %v2551_v28  ;;  %686 = vperm.xlu0 %1980, %v604_v26   ;;  %1157 = vmatpush.msrb.mxu0 %v2551_v28  ;;  %v1010_v29 = vpop.permute.xlu2 %1009  ;;  %v827_v30 = vpop.permute.xlu1 %826 }
  0xc4   :  { %v865_v33 = vmul.f32 %v2491_v20, %v827_v30  ;;  %v1409_v34 = vmul.f32 %v2480_v9, %v827_v30  ;;  %1897 = vmatmul.msk.f32.vlgmr.msra.gmra.mxu3 %vm126_vm0, %v3375_v63  ;;  %v1056_v42 = vmul.f32 %v2494_v21, %v1010_v29  ;;  %v1440_v46 = vmul.f32 %v2486_v13, %v1010_v29  ;;  %v618_v29 = vld [vmem:[%s2279_s25 + $0x80] sm:$0xff] }
  0xc5   :  { %v935_v35 = vpop.permute.xlu0 %934  ;;  %1158 = vmatpush.msrb.mxu0 %v2549_v27 }
  0xc6   :  { %v2561_v36 = vadd.f32 %v1058_v31, %v865_v33  ;;  %v2563_v37 = vadd.f32 %v1442_v32, %v1409_v34  ;;  %v1041_v48 = vmul.f32 %v2494_v21, %v935_v35  ;;  %v1425_v49 = vmul.f32 %v2486_v13, %v935_v35 }
  0xc7   :  { %v847_v32 = vmul.f32 %v2491_v20, %v2535_v6  ;;  %v1391_v33 = vmul.f32 %v2480_v9, %v2535_v6 }
  0xc8   :  { %3414 = vst [vmem:[#allocation28_spill] sm:$0xff] %v2563_v37 }
  0xc9   :  { %964 = vperm.xlu2 %1982, %v653_v38   ;;  %884 = vperm.xlu1 %1981, %v637_v40  }
  0xcb   :  { %959 = vperm.xlu0 %1980, %v652_v41   ;;  %v925_v39 = vpop.permute.xlu2 %924  ;;  %v742_v47 = vpop.permute.xlu1 %741 }
  0xcc   :  { %v848_v50 = vmul.f32 %v2491_v20, %v742_v47  ;;  %v1392_v52 = vmul.f32 %v2480_v9, %v742_v47  ;;  %v1423_v11 = vmul.f32 %v2486_v13, %v925_v39  ;;  %v1039_v30 = vmul.f32 %v2494_v21, %v925_v39  ;;  %v602_v39 = vld [vmem:[%s2279_s25] sm:$0xff]  ;;  %v651_v47 = vld [vmem:[%s2284_s29 + $0x88] sm:$0xff]  ;;  %s3463_s25 = sld [smem:[#allocation18_spill]] }
  0xcd   :  { %v817_v53 = vpop.permute.xlu0 %816 }
  0xce   :  { %v1073_v54 = vadd.f32 %v1041_v48, %v848_v50  ;;  %v2574_v55 = vadd.f32 %v1425_v49, %v1392_v52  ;;  %v863_v56 = vmul.f32 %v2491_v20, %v817_v53  ;;  %v1407_v58 = vmul.f32 %v2480_v9, %v817_v53  ;;  %v209_v50 = vld [vmem:[%s2264_s13] sm:$0xff]  ;;  %s2242_s13 = smov 127  }
  0xd0   :  { %v1106_v61 = vadd.f32 %v2514_v43, %v1073_v54  ;;  %v2581_v0 = vadd.f32 %v1056_v42, %v863_v56  ;;  %v2583_v1 = vadd.f32 %v1440_v46, %v1407_v58 }
  0xd1   :  { %879 = vperm.xlu2 %1982, %v636_v59   ;;  %766 = vperm.xlu1 %1981, %v620_v60  }
  0xd2   :  { %3415 = vst [vmem:[#allocation29_spill] sm:$0xff] %v2583_v1  ;;  %2000 = vtanh.f32 %v1106_v61 }
  0xd3   :  { %874 = vperm.xlu0 %1980, %v635_v2   ;;  %v2590_v7 = vpop.permute.xlu2 %806  ;;  %v1015_v10 = vpop.permute.xlu1 %1014 }
  0xd4   :  { %v1057_v12 = vmul.f32 %v2494_v21, %v1015_v10  ;;  %v1441_v14 = vmul.f32 %v2486_v13, %v1015_v10 }
  0xd5   :  { %v732_v15 = vpop.permute.xlu0 %731 }
  0xd6   :  { %v2595_v16 = vadd.f32 %v1057_v12, %v864_v3  ;;  %v1390_v57 = vmul.f32 %v2480_v9, %v732_v15  ;;  %v2600_v23 = vadd.f32 %v1441_v14, %v1408_v5  ;;  %v846_v31 = vmul.f32 %v2491_v20, %v732_v15  ;;  %v650_v3 = vld [vmem:[%s2284_s29 + $0x80] sm:$0xff] }
  0xd7   :  { %v634_v5 = vld [vmem:[%s2284_s29] sm:$0xff]  ;;  %s3464_s29 = sld [smem:[#allocation14_spill]] }
  0xd8   :  { %3416 = vst [vmem:[#allocation30_spill] sm:$0xff] %v2600_v23  ;;  %v2602_v44 = vpop.eup %2000  ;;  %v2604_v26 = vadd.f32 %v1423_v11, %v1390_v57  ;;  %v1071_v40 = vadd.f32 %v1039_v30, %v846_v31  ;;  %v1122_v4 = vadd.f32 %v2514_v43, %v2595_v16 }
  0xd9   :  { %3417 = vst [vmem:[#allocation31_spill] sm:$0xff] %v2602_v44  ;;  %761 = vperm.xlu2 %1982, %v619_v18   ;;  %681 = vperm.xlu1 %1981, %v603_v19  }
  0xda   :  { %1159 = vmatpush.msrb.mxu0 %v2602_v44  ;;  %v1104_v6 = vadd.f32 %v2514_v43, %v1071_v40 }
  0xdb   :  { %756 = vperm.xlu0 %1980, %v618_v29   ;;  %v2614_v34 = vpop.permute.xlu2 %721  ;;  %v930_v35 = vpop.permute.xlu1 %929 }
  0xdc   :  { %v1040_v38 = vmul.f32 %v2494_v21, %v930_v35  ;;  %v1424_v41 = vmul.f32 %v2486_v13, %v930_v35 }
  0xdd   :  { %v1005_v42 = vpop.permute.xlu0 %1004 }
  0xde   :  { %v1072_v46 = vadd.f32 %v1040_v38, %v847_v32  ;;  %v2620_v48 = vadd.f32 %v1424_v41, %v1391_v33  ;;  %v1055_v54 = vmul.f32 %v2494_v21, %v1005_v42  ;;  %v1439_v56 = vmul.f32 %v2486_v13, %v1005_v42 }
  0xe0   :  { %v1105_v49 = vadd.f32 %v2514_v43, %v1072_v46  ;;  %v861_v46 = vmul.f32 %v2491_v20, %v2590_v7 }
  0xe1   :  { %676 = vperm.xlu2 %1982, %v602_v39   ;;  %954 = vperm.xlu1 %1981, %v651_v47   ;;  %v1405_v39 = vmul.f32 %v2480_v9, %v2590_v7 }
  0xe2   :  { %2002 = vtanh.f32 %v1105_v49 }
  0xe3   :  { %v995_v52 = vpop.permute.xlu2 %994  ;;  %v812_v53 = vpop.permute.xlu1 %811  ;;  %211 = vrot.lane.b32.xlu0 %v209_v50, %s2241_s0  ;;  %2004 = vtanh.f32 %v1104_v6 }
  0xe4   :  { %v862_v58 = vmul.f32 %v2491_v20, %v812_v53  ;;  %v1406_v59 = vmul.f32 %v2480_v9, %v812_v53  ;;  %v1053_v12 = vmul.f32 %v2494_v21, %v995_v52  ;;  %v1437_v14 = vmul.f32 %v2486_v13, %v995_v52 }
  0xe5   :  { %v920_v60 = vpop.permute.xlu0 %919 }
  0xe6   :  { %v2629_v61 = vadd.f32 %v1055_v54, %v862_v58  ;;  %v2631_v2 = vadd.f32 %v1439_v56, %v1406_v59  ;;  %v1038_v18 = vmul.f32 %v2494_v21, %v920_v60  ;;  %v1422_v19 = vmul.f32 %v2486_v13, %v920_v60 }
  0xe8   :  { %3418 = vst [vmem:[#allocation32_spill] sm:$0xff] %v2631_v2  ;;  %v2635_v10 = vpop.eup %2002 }
  0xe9   :  { %3419 = vst [vmem:[#allocation33_spill] sm:$0xff] %v2635_v10  ;;  %949 = vperm.xlu2 %1982, %v650_v3   ;;  %869 = vperm.xlu1 %1981, %v634_v5   ;;  %v2638_v11 = vpop.eup %2004  ;;  %v844_v5 = vmul.f32 %v2491_v20, %v2614_v34 }
  0xea   :  { %1160 = vmatpush.msrb.mxu0 %v2635_v10  ;;  %3420 = vst [vmem:[#allocation34_spill] sm:$0xff] %v2638_v11 }
  0xeb   :  { %v910_v15 = vpop.permute.xlu2 %909  ;;  %v727_v57 = vpop.permute.xlu1 %726 }
  0xec   :  { %v845_v29 = vmul.f32 %v2491_v20, %v727_v57  ;;  %v1389_v30 = vmul.f32 %v2480_v9, %v727_v57  ;;  %1161 = vmatpush.msrb.mxu0 %v2638_v11  ;;  %v1420_v50 = vmul.f32 %v2486_v13, %v910_v15  ;;  %v1036_v7 = vmul.f32 %v2494_v21, %v910_v15 }
  0xed   :  { %v802_v31 = vpop.permute.xlu0 %801 }
  0xee   :  { %v1070_v32 = vadd.f32 %v1038_v18, %v845_v29  ;;  %v2647_v33 = vadd.f32 %v1422_v19, %v1389_v30  ;;  %v860_v35 = vmul.f32 %v2491_v20, %v802_v31  ;;  %v1404_v38 = vmul.f32 %v2480_v9, %v802_v31 }
  0xf0   :  { %v1103_v40 = vadd.f32 %v2514_v43, %v1070_v32  ;;  %v2652_v41 = vadd.f32 %v1053_v12, %v860_v35  ;;  %v2654_v42 = vadd.f32 %v1437_v14, %v1404_v38  ;;  %v1388_v12 = vmul.f32 %v2480_v9, %v2614_v34 }
  0xf2   :  { %3421 = vst [vmem:[#allocation35_spill] sm:$0xff] %v2654_v42  ;;  %2006 = vtanh.f32 %v1103_v40 }
  0xf3   :  { %v2660_v47 = vpop.permute.xlu2 %791  ;;  %v1000_v49 = vpop.permute.xlu1 %999 }
  0xf4   :  { %v1054_v6 = vmul.f32 %v2494_v21, %v1000_v49  ;;  %v1438_v52 = vmul.f32 %v2486_v13, %v1000_v49 }
  0xf5   :  { %v717_v53 = vpop.permute.xlu0 %716 }
  0xf6   :  { %v2665_v54 = vadd.f32 %v1054_v6, %v861_v46  ;;  %v1387_v56 = vmul.f32 %v2480_v9, %v717_v53  ;;  %v2668_v58 = vadd.f32 %v1438_v52, %v1405_v39  ;;  %v843_v60 = vmul.f32 %v2491_v20, %v717_v53 }
  0xf8   :  { %3422 = vst [vmem:[#allocation36_spill] sm:$0xff] %v2668_v58  ;;  %v2670_v59 = vpop.eup %2006  ;;  %v2674_v3 = vadd.f32 %v1420_v50, %v1387_v56  ;;  %v1068_v18 = vadd.f32 %v1036_v7, %v843_v60  ;;  %v2711_v7 = vld [vmem:[%s2344_s12 + $0x18] sm:$0xff] }
  0xf9   :  { %3423 = vst [vmem:[#allocation37_spill] sm:$0xff] %v2670_v59  ;;  %1162 = vmatpush.msrb.mxu0 %v2670_v59  ;;  %394 = vmatpush.msrb.mxu1 %v2711_v7 }
  0xfa   :  { %v1101_v32 = vadd.f32 %v2514_v43, %v1068_v18 }
  0xfb   :  { %v2681_v14 = vpop.permute.xlu2 %706  ;;  %v915_v57 = vpop.permute.xlu1 %914 }
  0xfc   :  { %v1037_v19 = vmul.f32 %v2494_v21, %v915_v57  ;;  %v1421_v15 = vmul.f32 %v2486_v13, %v915_v57  ;;  %v1385_v59 = vmul.f32 %v2480_v9, %v2681_v14 }
  0xfd   :  { %v2685_v29 = vpop.permute.xlu0 %989 }
  0xfe   :  { %v1069_v30 = vadd.f32 %v1037_v19, %v844_v5  ;;  %v2687_v31 = vadd.f32 %v1421_v15, %v1388_v12  ;;  %v1436_v40 = vmul.f32 %v2486_v13, %v2685_v29 }
 0x100   :  { %v1102_v35 = vadd.f32 %v2514_v43, %v1069_v30  ;;  %v2726_v30 = vld [vmem:[%s2344_s12 + $0x10] sm:$0xff] }
 0x101   :  { %395 = vmatpush.msrb.mxu1 %v2726_v30 }
 0x102   :  { %2008 = vtanh.f32 %v1102_v35 }
 0x103   :  { %v2691_v34 = vpop.permute.xlu2 %979  ;;  %v2693_v38 = vpop.permute.xlu1 %796  ;;  %2010 = vtanh.f32 %v1101_v32 }
 0x104   :  { %v1403_v46 = vmul.f32 %v2480_v9, %v2693_v38  ;;  %2012 = vtanh.f32 %v2448_v45  ;;  %v1434_v52 = vmul.f32 %v2486_v13, %v2691_v34 }
 0x105   :  { %v905_v39 = vpop.permute.xlu0 %904  ;;  %2014 = vtanh.f32 %v2456_v51  ;;  %v2737_v51 = vld [vmem:[%s2344_s12] sm:$0xff] }
 0x106   :  { %v2699_v49 = vadd.f32 %v1436_v40, %v1403_v46  ;;  %v1035_v60 = vmul.f32 %v2494_v21, %v905_v39  ;;  %v1419_v5 = vmul.f32 %v2486_v13, %v905_v39  ;;  %v2733_v40 = vld [vmem:[%s2344_s12 + $0x8] sm:$0xff] }
 0x107   :  { %396 = vmatpush.msrb.mxu1 %v2733_v40 }
 0x108   :  { %3424 = vst [vmem:[#allocation38_spill] sm:$0xff] %v2699_v49  ;;  %v2701_v50 = vpop.eup %2008 }
 0x109   :  { %3425 = vst [vmem:[#allocation39_spill] sm:$0xff] %v2701_v50  ;;  %1163 = vmatpush.msrb.mxu0 %v2701_v50  ;;  %v2704_v6 = vpop.eup %2010  ;;  %397 = vmatpush.msrb.mxu1 %v2737_v51 }
 0x10a   :  { %3426 = vst [vmem:[#allocation40_spill] sm:$0xff] %v2704_v6  ;;  %v2013_v46 = vpop.eup %2012 }
 0x10b   :  { %v895_v53 = vpop.permute.xlu2 %894  ;;  %v712_v56 = vpop.permute.xlu1 %711  ;;  %1164 = vmatpush.msrb.mxu0 %v2704_v6  ;;  %544 = vmatpush.msra.mxu1 %v2013_v46  ;;  %v841_v46 = vmul.f32 %v2491_v20, %v2681_v14 }
 0x10c   :  { %v842_v12 = vmul.f32 %v2491_v20, %v712_v56  ;;  %v1386_v45 = vmul.f32 %v2480_v9, %v712_v56  ;;  %v2015_v39 = vpop.eup %2014  ;;  %v1402_v56 = vmul.f32 %v2480_v9, %v2660_v47  ;;  %v1033_v63 = vmul.f32 %v2494_v21, %v895_v53 }
 0x10d   :  { %v2719_v57 = vpop.permute.xlu0 %786  ;;  %545 = vmatpush.msra.mxu1 %v2015_v39 }
 0x10e   :  { %v1067_v18 = vadd.f32 %v1035_v60, %v842_v12  ;;  %v2721_v19 = vadd.f32 %v1419_v5, %v1386_v45  ;;  %v1401_v15 = vmul.f32 %v2480_v9, %v2719_v57  ;;  %v857_v16 = vmul.f32 %v2491_v20, %v2719_v57 }
 0x110   :  { %v1100_v32 = vadd.f32 %v2514_v43, %v1067_v18  ;;  %v2730_v35 = vadd.f32 %v1434_v52, %v1401_v15  ;;  %v1417_v52 = vmul.f32 %v2486_v13, %v895_v53 }
 0x112   :  { %3427 = vst [vmem:[#allocation41_spill] sm:$0xff] %v2730_v35  ;;  %2016 = vtanh.f32 %v1100_v32 }
 0x113   :  { %v2741_v60 = vpop.permute.xlu2 %776  ;;  %v2743_v5 = vpop.permute.xlu1 %984 }
 0x114   :  { %v1435_v12 = vmul.f32 %v2486_v13, %v2743_v5 }
 0x115   :  { %v702_v45 = vpop.permute.xlu0 %701 }
 0x116   :  { %v1384_v18 = vmul.f32 %v2480_v9, %v702_v45  ;;  %v2750_v15 = vadd.f32 %v1435_v12, %v1402_v56  ;;  %v840_v6 = vmul.f32 %v2491_v20, %v702_v45 }
 0x118   :  { %3428 = vst [vmem:[#allocation42_spill] sm:$0xff] %v2750_v15  ;;  %v2752_v32 = vpop.eup %2016  ;;  %v2756_v50 = vadd.f32 %v1417_v52, %v1384_v18  ;;  %v1065_v39 = vadd.f32 %v1033_v63, %v840_v6 }
 0x119   :  { %3429 = vst [vmem:[#allocation43_spill] sm:$0xff] %v2752_v32  ;;  %1165 = vmatpush.msrb.mxu0 %v2752_v32 }
 0x11a   :  { %v1098_v18 = vadd.f32 %v2514_v43, %v1065_v39 }
 0x11b   :  { %v900_v11 = vpop.permute.xlu1 %899  ;;  %v2764_v12 = vpop.permute.xlu2 %691 }
 0x11c   :  { %v1034_v56 = vmul.f32 %v2494_v21, %v900_v11  ;;  %v1418_v53 = vmul.f32 %v2486_v13, %v900_v11 }
 0x11d   :  { %v975_v10 = vpop.permute.xlu0 %974 }
 0x11e   :  { %v1066_v45 = vadd.f32 %v1034_v56, %v841_v46  ;;  %v2767_v52 = vadd.f32 %v1418_v53, %v1385_v59  ;;  %v1433_v14 = vmul.f32 %v2486_v13, %v975_v10 }
 0x120   :  { %v1099_v32 = vadd.f32 %v2514_v43, %v1066_v45 }
 0x122   :  { %2018 = vtanh.f32 %v1099_v32  ;;  %v1124_v32 = vadd.f32 %v2514_v43, %v2541_v17 }
 0x123   :  { %v782_v44 = vpop.permute.xlu1 %781  ;;  %2020 = vtanh.f32 %v1098_v18  ;;  %v2775_v28 = vpop.permute.xlu2 %964  ;;  %v1123_v18 = vadd.f32 %v2514_v43, %v2561_v36  ;;  %v1121_v36 = vadd.f32 %v2514_v43, %v2581_v0  ;;  %v1052_v0 = vmul.f32 %v2494_v21, %v2685_v29 }
 0x124   :  { %v1400_v63 = vmul.f32 %v2480_v9, %v782_v44  ;;  %2022 = vtanh.f32 %v1124_v32  ;;  %v858_v32 = vmul.f32 %v2491_v20, %v2660_v47  ;;  %v1118_v47 = vadd.f32 %v2514_v43, %v2652_v41 }
 0x125   :  { %v890_v6 = vpop.permute.xlu0 %889  ;;  %2024 = vtanh.f32 %v1123_v18  ;;  %v1119_v29 = vadd.f32 %v2514_v43, %v2665_v54 }
 0x126   :  { %v2773_v27 = vadd.f32 %v1433_v14, %v1400_v63  ;;  %v1032_v39 = vmul.f32 %v2494_v21, %v890_v6  ;;  %v1416_v56 = vmul.f32 %v2486_v13, %v890_v6  ;;  %v1431_v63 = vmul.f32 %v2486_v13, %v2775_v28 }
 0x128   :  { %3430 = vst [vmem:[#allocation44_spill] sm:$0xff] %v2773_v27  ;;  %v2777_v11 = vpop.eup %2018 }
 0x129   :  { %3431 = vst [vmem:[#allocation45_spill] sm:$0xff] %v2777_v11  ;;  %1166 = vmatpush.msrb.mxu0 %v2777_v11  ;;  %v2780_v59 = vpop.eup %2020 }
 0x12a   :  { %3432 = vst [vmem:[#allocation46_spill] sm:$0xff] %v2780_v59 }
 0x12b   :  { %v697_v46 = vpop.permute.xlu1 %696  ;;  %1167 = vmatpush.msrb.mxu0 %v2780_v59 }
 0x12c   :  { %v839_v53 = vmul.f32 %v2491_v20, %v697_v46  ;;  %v1383_v45 = vmul.f32 %v2480_v9, %v697_v46  ;;  %v2801_v46 = vpop.permute.xlu2 %879 }
 0x12d   :  { %v772_v14 = vpop.permute.xlu0 %771 }
 0x12e   :  { %v1064_v11 = vadd.f32 %v1032_v39, %v839_v53  ;;  %v2793_v17 = vadd.f32 %v1416_v56, %v1383_v45  ;;  %v1398_v59 = vmul.f32 %v2480_v9, %v772_v14  ;;  %v859_v39 = vmul.f32 %v2491_v20, %v2693_v38 }
 0x12f   :  { %v1050_v56 = vmul.f32 %v2494_v21, %v2691_v34  ;;  %v1051_v38 = vmul.f32 %v2494_v21, %v2743_v5  ;;  %v856_v34 = vmul.f32 %v2491_v20, %v782_v44 }
 0x130   :  { %v1097_v6 = vadd.f32 %v2514_v43, %v1064_v11  ;;  %v2799_v22 = vadd.f32 %v1431_v63, %v1398_v59  ;;  %v1120_v59 = vadd.f32 %v2514_v43, %v2629_v61  ;;  %v2825_v61 = vpop.eup %2022  ;;  %v1084_v5 = vadd.f32 %v1052_v0, %v859_v39 }
 0x131   :  { %v2832_v18 = vpop.eup %2024  ;;  %v1082_v44 = vadd.f32 %v1050_v56, %v857_v16  ;;  %v1049_v63 = vmul.f32 %v2494_v21, %v975_v10  ;;  %v1083_v54 = vadd.f32 %v1051_v38, %v858_v32  ;;  %v1984_v10 = vld [vmem:[%s2319_s6] ss:$0 sm:$0xff]  ;;  %v854_v32 = vmul.f32 %v2491_v20, %v772_v14  ;;  %s3485_s6 = sld [smem:[#allocation21_spill]] }
 0x132   :  { %3433 = vst [vmem:[#allocation47_spill] sm:$0xff] %v2799_v22  ;;  %2026 = vtanh.f32 %v1097_v6  ;;  %v1117_v56 = vadd.f32 %v2514_v43, %v1084_v5  ;;  %v3436_v22 = vmov 0.0625  }
 0x133   :  { %2028 = vtanh.f32 %v1122_v4  ;;  %v970_v11 = vpop.permute.xlu1 %969  ;;  %v1399_v4 = vmul.f32 %v2480_v9, %v2741_v60  ;;  %v1081_v0 = vadd.f32 %v1049_v63, %v856_v34  ;;  %v1116_v5 = vadd.f32 %v2514_v43, %v1083_v54 }
 0x134   :  { %v1432_v57 = vmul.f32 %v2486_v13, %v970_v11  ;;  %2030 = vtanh.f32 %v1121_v36  ;;  %v1048_v16 = vmul.f32 %v2494_v21, %v970_v11  ;;  %v2853_v38 = vpop.permute.xlu2 %761  ;;  %v838_v11 = vmul.f32 %v2491_v20, %v2764_v12 }
 0x135   :  { %v2823_v53 = vpop.permute.xlu0 %686  ;;  %v376_v45 = vpop.f32.mrf.mxu0  ;;  %2032 = vtanh.f32 %v1120_v59  ;;  %v1115_v59 = vadd.f32 %v2514_v43, %v1082_v44  ;;  %v1047_v44 = vmul.f32 %v2494_v21, %v2775_v28  ;;  %v1114_v63 = vadd.f32 %v2514_v43, %v1081_v0 }
 0x136   :  { %1896 = vmatmul.msk.f32.vlgmr.msrb.gmra.mxu1 %vm175_vm1, %v376_v45  ;;  %v2835_v6 = vadd.f32 %v1432_v57, %v1399_v4  ;;  %v837_v36 = vmul.f32 %v2491_v20, %v2823_v53  ;;  %v1030_v45 = vmul.f32 %v2494_v21, %v2801_v46  ;;  %2034 = vtanh.f32 %v1119_v29 }
 0x137   :  { %1180 = vmatpush.msrb.mxu1 %v2825_v61  ;;  %2036 = vtanh.f32 %v1118_v47  ;;  %v855_v29 = vmul.f32 %v2491_v20, %v2741_v60 }
 0x138   :  { %3434 = vst [vmem:[#allocation48_spill] sm:$0xff] %v2835_v6  ;;  %v2840_v41 = vpop.eup %2026  ;;  %v1062_v4 = vadd.f32 %v1030_v45, %v837_v36  ;;  %2038 = vtanh.f32 %v1117_v56  ;;  %v1079_v6 = vadd.f32 %v1047_v44, %v854_v32 }
 0x139   :  { %3435 = vst [vmem:[#allocation49_spill] sm:$0xff] %v2840_v41  ;;  %v2842_v39 = vpop.eup %2028  ;;  %1181 = vmatpush.msrb.mxu1 %v2832_v18  ;;  %1168 = vmatpush.msrb.mxu0 %v2840_v41  ;;  %v1080_v54 = vadd.f32 %v1048_v16, %v855_v29  ;;  %2040 = vtanh.f32 %v1115_v59 }
 0x13a   :  { %v2858_v57 = vpop.eup %2030  ;;  %v1095_v27 = vadd.f32 %v2514_v43, %v1062_v4  ;;  %2042 = vtanh.f32 %v1116_v5  ;;  %v1112_v16 = vadd.f32 %v2514_v43, %v1079_v6 }
 0x13b   :  { %1182 = vmatpush.msrb.mxu1 %v2842_v39  ;;  %v2856_v34 = vpop.permute.xlu1 %884  ;;  %v196_v47 = vpop.f32.mrf.mxu1  ;;  %2044 = vtanh.f32 %v1114_v63 }
 0x13c   :  { %v1031_v14 = vmul.f32 %v2494_v21, %v2856_v34  ;;  %v2870_v36 = vadd.f32 %v1984_v10, %v196_v47  ;;  %v2873_v60 = vpop.eup %2032  ;;  %v2897_v44 = vpop.permute.xlu2 %676 }
 0x13d   :  { %v960_v45 = vpop.permute.xlu0 %959  ;;  %1183 = vmatpush.msrb.mxu1 %v2858_v57  ;;  %v2880_v0 = vpop.eup %2034 }
 0x13e   :  { %v1063_v41 = vadd.f32 %v1031_v14, %v838_v11  ;;  %1899 = vmatmul.msk.f32.vlgmr.msra.gmra.mxu1 %vm126_vm0, %v3436_v22  ;;  %v200_v28 = vand.u32 2147483647, %v2870_v36  ;;  %v2883_v47 = vpop.eup %2036  ;;  %v1113_v22 = vadd.f32 %v2514_v43, %v1080_v54  ;;  %v1430_v29 = vmul.f32 %v2486_v13, %v960_v45 }
 0x13f   :  { %1184 = vmatpush.msrb.mxu1 %v2873_v60  ;;  %v2889_v4 = vpop.eup %2038  ;;  %v199_v23 = vmax.f32 %v2870_v36, 0.0 }
 0x140   :  { %v1096_v10 = vadd.f32 %v2514_v43, %v1063_v41  ;;  %v201_v56 = vsub.f32 0.0, %v200_v28  ;;  %v1046_v41 = vmul.f32 %v2494_v21, %v960_v45  ;;  %v2895_v14 = vpop.eup %2040 }
 0x141   :  { %1185 = vmatpush.msrb.mxu1 %v2880_v0  ;;  %v2902_v6 = vpop.eup %2042 }
 0x142   :  { %2046 = vtanh.f32 %v1096_v10  ;;  %v202_v59 = vmul.f32 1.442695, %v201_v56  ;;  %v2906_v45 = vpop.eup %2044 }
 0x143   :  { %2048 = vtanh.f32 %v1095_v27  ;;  %1186 = vmatpush.msrb.mxu1 %v2883_v47  ;;  %v767_v32 = vpop.permute.xlu1 %766 }
 0x144   :  { %v853_v5 = vmul.f32 %v2491_v20, %v767_v32  ;;  %v1397_v11 = vmul.f32 %v2480_v9, %v767_v32  ;;  %2050 = vpow2.f32 %v202_v59 }
 0x145   :  { %v2899_v27 = vpop.permute.xlu0 %874  ;;  %1187 = vmatpush.msrb.mxu1 %v2889_v4  ;;  %2052 = vtanh.f32 %v1113_v22 }
 0x146   :  { %v1078_v63 = vadd.f32 %v1046_v41, %v853_v5  ;;  %v2904_v54 = vadd.f32 %v1430_v29, %v1397_v11  ;;  %2054 = vtanh.f32 %v1112_v16  ;;  %v2922_v16 = vld [vmem:[%s2344_s12 + $0x78] sm:$0xff]  ;;  %v1029_v29 = vmul.f32 %v2494_v21, %v2899_v27 }
 0x147   :  { %1188 = vmatpush.msrb.mxu1 %v2902_v6  ;;  %v466_v28 = vpop.f32.mrf.mxu3  ;;  %289 = vmatpush.msra.mxu2 %v2922_v16 }
 0x148   :  { %3437 = vst [vmem:[#allocation50_spill] sm:$0xff] %v2904_v54  ;;  %v2909_v10 = vpop.eup %2046  ;;  %v1111_v56 = vadd.f32 %v2514_v43, %v1078_v63  ;;  %1898 = vmatmul.msk.f32.vlgmr.msra.gmra.mxu0 %vm175_vm1, %v466_v28  ;;  %v2935_v28 = vld [vmem:[%s2344_s12 + $0x70] sm:$0xff] }
 0x149   :  { %3438 = vst [vmem:[#allocation51_spill] sm:$0xff] %v2909_v10  ;;  %v2913_v59 = vpop.eup %2048  ;;  %1189 = vmatpush.msrb.mxu1 %v2895_v14  ;;  %1169 = vmatpush.msrb.mxu0 %v2909_v10  ;;  %v2940_v10 = vpop.permute.xlu2 %949 }
 0x14a   :  { %3439 = vst [vmem:[#allocation52_spill] sm:$0xff] %v2913_v59  ;;  %2056 = vtanh.f32 %v1111_v56  ;;  %v2051_v22 = vpop.eup %2050  ;;  %290 = vmatpush.msra.mxu2 %v2935_v28 }
 0x14b   :  { %1190 = vmatpush.msrb.mxu1 %v2906_v45  ;;  %v2918_v32 = vpop.permute.xlu1 %681  ;;  %1170 = vmatpush.msrb.mxu0 %v2913_v59  ;;  %v2924_v41 = vpop.eup %2052  ;;  %v204_v11 = vadd.f32 1.0, %v2051_v22  ;;  %3441 = vst [vmem:[#allocation54_spill] sm:$0xff] %v2940_v10  ;;  %v2944_v22 = vld [vmem:[%s2344_s12 + $0x68] sm:$0xff] }
 0x14c   :  { %v836_v5 = vmul.f32 %v2491_v20, %v2918_v32  ;;  %v2937_v56 = vpop.eup %2054  ;;  %291 = vmatpush.msra.mxu2 %v2944_v22 }
 0x14d   :  { %v2931_v63 = vpop.permute.xlu0 %756  ;;  %1191 = vmatpush.msrb.mxu1 %v2924_v41  ;;  %2058 = vlog2.f32 %v204_v11  ;;  %v2960_v11 = vperm.slane %v2477_v8, 3 }
 0x14e   :  { %3440 = vst [vmem:[#allocation53_spill] sm:$0xff] %v2931_v63  ;;  %v1061_v59 = vadd.f32 %v1029_v29, %v836_v5  ;;  %v851_v15 = vmul.f32 %v2491_v20, %v2931_v63  ;;  %v2954_v29 = vld [vmem:[%s2344_s12 + $0x60] sm:$0xff]  ;;  %v1044_v5 = vmul.f32 %v2494_v21, %v2940_v10  ;;  %v1396_v63 = vmul.f32 %v2480_v9, %v2853_v38 }
 0x14f   :  { %1192 = vmatpush.msrb.mxu1 %v2937_v56  ;;  %292 = vmatpush.msra.mxu2 %v2954_v29  ;;  %v1492_v37 = vadd.f32 %v2960_v11, %v2524_v62 }
 0x150   :  { %v2946_v54 = vpop.eup %2056  ;;  %v1094_v35 = vadd.f32 %v2514_v43, %v1061_v59  ;;  %v852_v59 = vmul.f32 %v2491_v20, %v2853_v38  ;;  %v1076_v42 = vadd.f32 %v1044_v5, %v851_v15 }
 0x151   :  { %3442 = vst [vmem:[#allocation55_spill] sm:$0xff] %v2946_v54  ;;  %1193 = vmatpush.msrb.mxu1 %v2946_v54 }
 0x152   :  { %2060 = vtanh.f32 %v1094_v35  ;;  %v1109_v54 = vadd.f32 %v2514_v43, %v1076_v42 }
 0x153   :  { %v955_v49 = vpop.permute.xlu1 %954  ;;  %v2059_v1 = vpop.eup %2058 }
 0x154   :  { %v1045_v58 = vmul.f32 %v2494_v21, %v955_v49  ;;  %v1429_v2 = vmul.f32 %v2486_v13, %v955_v49  ;;  %v206_v8 = vmul.f32 0.6931472, %v2059_v1  ;;  %v835_v1 = vmul.f32 %v2491_v20, %v2897_v44 }
 0x155   :  { %v212_v5 = vpop.permute.xlu0 %211  ;;  %v1489_v20 = vadd.f32 %v2960_v11, %v2620_v48  ;;  %v1487_v48 = vadd.f32 %v2960_v11, %v2647_v33  ;;  %v1485_v33 = vadd.f32 %v2960_v11, %v2674_v3  ;;  %v1483_v3 = vadd.f32 %v2960_v11, %v2767_v52 }
 0x156   :  { %v1077_v10 = vadd.f32 %v1045_v58, %v852_v59  ;;  %v2968_v35 = vadd.f32 %v1429_v2, %v1396_v63  ;;  %v207_v38 = vadd.f32 %v206_v8, %v199_v23  ;;  %v1491_v2 = vadd.f32 %v2960_v11, %v2499_v25  ;;  %v3003_v59 = vld [vmem:[%s3443_s9 + $0x8] sm:$0xff] }
 0x158   :  { %v2973_v24 = vpop.eup %2060  ;;  %v1110_v15 = vadd.f32 %v2514_v43, %v1077_v10  ;;  %v208_v58 = vadd.f32 1e-06, %v207_v38  ;;  %v1490_v10 = vadd.f32 %v2960_v11, %v2574_v55  ;;  %v1488_v55 = vadd.f32 %v2960_v11, %v2604_v26 }
 0x159   :  { %1171 = vmatpush.msrb.mxu0 %v2973_v24  ;;  %v1486_v26 = vadd.f32 %v2960_v11, %v2687_v31 }
 0x15a   :  { %2062 = vtanh.f32 %v1110_v15  ;;  %v214_v49 = vmul.f32 %v212_v5, %v208_v58  ;;  %v1777_v23 = vmul.f32 %v208_v58, %v208_v58 }
 0x15b   :  { %2064 = vtanh.f32 %v1492_v37  ;;  %v2982_v62 = vpop.permute.xlu1 %869 }
 0x15c   :  { %2066 = vtanh.f32 %v1109_v54  ;;  %v1028_v42 = vmul.f32 %v2494_v21, %v2982_v62  ;;  %1779 = vrot.lane.b32.xlu0 %v1777_v23, %s2242_s13  ;;  %216 = vrot.lane.b32.xlu1 %v214_v49, %s2242_s13  ;;  %v1415_v49 = vmul.f32 %v2486_v13, %v2856_v34  ;;  %v1482_v34 = vadd.f32 %v2960_v11, %v2756_v50 }
 0x15d   :  { %2068 = vlog2.f32 %v208_v58  ;;  %v3020_v58 = vld [vmem:[%s3443_s9] sm:$0xff] }
 0x15e   :  { %v1060_v63 = vadd.f32 %v1028_v42, %v835_v1  ;;  %2070 = vtanh.f32 %v1491_v2  ;;  %v1484_v1 = vadd.f32 %v2960_v11, %v2721_v19  ;;  %v3038_v42 = vld [vmem:[%s3443_s9 + $0x18] sm:$0xff]  ;;  %v1381_v19 = vmul.f32 %v2480_v9, %v2823_v53 }
 0x15f   :  { %2072 = vtanh.f32 %v1490_v10  ;;  %v1382_v10 = vmul.f32 %v2480_v9, %v2764_v12  ;;  %v1380_v12 = vmul.f32 %v2480_v9, %v2918_v32  ;;  %v1481_v53 = vadd.f32 %v2960_v11, %v2793_v17  ;;  %v668_v32 = vld [vmem:[%s3443_s9 + $0x10] sm:$0xff] }
 0x160   :  { %v2992_v25 = vpop.eup %2062  ;;  %v1093_v21 = vadd.f32 %v2514_v43, %v1060_v63  ;;  %v1414_v63 = vmul.f32 %v2486_v13, %v2801_v46  ;;  %v1412_v46 = vmul.f32 %v2486_v13, %v2982_v62 }
 0x161   :  { %v2995_v37 = vpop.eup %2064  ;;  %1194 = vmatpush.msrb.mxu1 %v2992_v25 }
 0x162   :  { %v3000_v54 = vpop.eup %2066  ;;  %2074 = vtanh.f32 %v1093_v21  ;;  %v1446_v21 = vadd.f32 %v1414_v63, %v1381_v19  ;;  %v2141_v63 = vld [vmem:[%s2344_s12 + $0x20] sm:$0xff] }
 0x163   :  { %v2069_v8 = vpop.eup %2068  ;;  %2076 = vtanh.f32 %v1489_v20  ;;  %1195 = vmatpush.msrb.mxu1 %v3000_v54  ;;  %v1447_v20 = vadd.f32 %v1415_v49, %v1382_v10 }
 0x164   :  { %v1784_v43 = vmul.f32 0.6931472, %v2069_v8  ;;  %v3009_v15 = vpop.eup %2070  ;;  %2078 = vtanh.f32 %v1488_v55  ;;  %1196 = vmatmul.f32.vlgmr.msrb.gmra.mxu1 %v3003_v59  ;;  %v1413_v55 = vmul.f32 %v2486_v13, %v2899_v27  ;;  %v231_v8 = vld [vmem:[%s2344_s12 + $0x58] sm:$0xff]  ;;  %v229_v27 = vld [vmem:[%s2344_s12 + $0x48] sm:$0xff] }
 0x165   :  { %1541 = vmatpush.msra.mxu1 %v2995_v37  ;;  %v3015_v5 = vpop.eup %2072  ;;  %2080 = vtanh.f32 %v1487_v48  ;;  %v230_v48 = vld [vmem:[%s2344_s12 + $0x50] sm:$0xff]  ;;  %v1480_v17 = vadd.f32 %v2960_v11, %v1447_v20  ;;  %567 = vmatpush.msrb.mxu3 %v231_v8 }
 0x166   :  { %v1785_v38 = vmul.f32 2.0, %v1784_v43  ;;  %2082 = vtanh.f32 %v1486_v26  ;;  %v1379_v26 = vmul.f32 %v2480_v9, %v2897_v44  ;;  %293 = vmatpush.msra.mxu2 %v231_v8 }
 0x167   :  { %1542 = vmatpush.msra.mxu1 %v3009_v15  ;;  %2084 = vtanh.f32 %v1485_v33  ;;  %v1479_v33 = vadd.f32 %v2960_v11, %v1446_v21  ;;  %568 = vmatpush.msrb.mxu3 %v230_v48 }
 0x168   :  { %v3022_v2 = vpop.eup %2074  ;;  %1787 = vrot.lane.b32.xlu1 %v1785_v38, %s2242_s13  ;;  %2086 = vtanh.f32 %v1484_v1  ;;  %v1445_v38 = vadd.f32 %v1413_v55, %v1380_v12  ;;  %v1444_v1 = vadd.f32 %v1412_v46, %v1379_v26  ;;  %294 = vmatpush.msra.mxu2 %v230_v48  ;;  %v3135_v55 = vld [vmem:[%s3446_s21 + $0x8] sm:$0xff] }
 0x169   :  { %1543 = vmatpush.msra.mxu1 %v3015_v5  ;;  %v3026_v31 = vpop.eup %2076  ;;  %1172 = vmatpush.msrb.mxu0 %v3022_v2  ;;  %2088 = vtanh.f32 %v1483_v3  ;;  %v3451_v46 = vld [vmem:[#allocation32_spill] sm:$0xff] }
 0x16a   :  { %1173 = vmatmul.f32.vlgmr.msrb.gmra.mxu0 %v3020_v58  ;;  %v2079_v23 = vpop.eup %2078  ;;  %2090 = vtanh.f32 %v1482_v34  ;;  %v1478_v44 = vadd.f32 %v2960_v11, %v1445_v38  ;;  %569 = vmatpush.msrb.mxu3 %v229_v27  ;;  %v1477_v3 = vadd.f32 %v2960_v11, %v1444_v1  ;;  %v3452_v48 = vld [vmem:[#allocation36_spill] sm:$0xff] }
 0x16b   :  { %1544 = vmatpush.msra.mxu1 %v3026_v31  ;;  %1297 = vmatpush.msra.mxu0 %v2922_v16  ;;  %v2081_v52 = vpop.eup %2080  ;;  %2092 = vtanh.f32 %v1481_v53  ;;  %v3450_v53 = vld [vmem:[#allocation29_spill] sm:$0xff] }
 0x16c   :  { %1199 = vmatmul.f32.gmra.mxu1 %v3038_v42  ;;  %v2083_v50 = vpop.eup %2082  ;;  %2094 = vtanh.f32 %v1480_v17  ;;  %295 = vmatpush.msra.mxu2 %v229_v27  ;;  %v1505_v21 = vadd.f32 %v2960_v11, %v3450_v53  ;;  %v3453_v17 = vld [vmem:[#allocation35_spill] sm:$0xff] }
 0x16d   :  { %1545 = vmatpush.msra.mxu1 %v2079_v23  ;;  %1298 = vmatpush.msra.mxu0 %v2935_v28  ;;  %v2085_v43 = vpop.eup %2084  ;;  %2096 = vtanh.f32 %v1479_v33  ;;  %v1502_v38 = vadd.f32 %v2960_v11, %v3453_v17 }
 0x16e   :  { %v2087_v62 = vpop.eup %2086  ;;  %2098 = vtanh.f32 %v1478_v44 }
 0x16f   :  { %1546 = vmatpush.msra.mxu1 %v2081_v52  ;;  %1299 = vmatpush.msra.mxu0 %v2944_v22  ;;  %v2089_v49 = vpop.eup %2088  ;;  %2100 = vtanh.f32 %v1477_v3  ;;  %v3456_v3 = vld [vmem:[#allocation41_spill] sm:$0xff] }
 0x171   :  { %1547 = vmatpush.msra.mxu1 %v2083_v50  ;;  %1300 = vmatpush.msra.mxu0 %v2954_v29 }
 0x172   :  { %1176 = vmatmul.f32.gmra.mxu0 %v668_v32 }
 0x173   :  { %1617 = vmatpush.msrb.mxu0 %v2995_v37  ;;  %1548 = vmatpush.msra.mxu1 %v2085_v43  ;;  %v2091_v37 = vpop.eup %2090 }
 0x174   :  { %v2093_v10 = vpop.eup %2092 }
 0x175   :  { %1618 = vmatpush.msrb.mxu0 %v3009_v15  ;;  %1549 = vmatpush.msra.mxu1 %v2087_v62  ;;  %v2095_v15 = vpop.eup %2094 }
 0x176   :  { %v2097_v19 = vpop.eup %2096 }
 0x177   :  { %1619 = vmatpush.msrb.mxu0 %v3015_v5  ;;  %1550 = vmatpush.msra.mxu1 %v2089_v49  ;;  %v2099_v5 = vpop.eup %2098 }
 0x178   :  { %v2101_v34 = vpop.eup %2100 }
 0x179   :  { %1620 = vmatpush.msrb.mxu0 %v3026_v31  ;;  %1551 = vmatpush.msra.mxu1 %v2091_v37  ;;  %v228_v31 = vld [vmem:[%s2344_s12 + $0x40] sm:$0xff] }
 0x17a   :  { %570 = vmatpush.msrb.mxu3 %v228_v31  ;;  %296 = vmatpush.msra.mxu2 %v228_v31  ;;  %v3458_v31 = vld [vmem:[#allocation48_spill] sm:$0xff] }
 0x17b   :  { %1621 = vmatpush.msrb.mxu0 %v2079_v23  ;;  %1552 = vmatpush.msra.mxu1 %v2093_v10  ;;  %v2138_v23 = vld [vmem:[%s2344_s12 + $0x38] sm:$0xff] }
 0x17c   :  { %1222 = vmatpush.msra.mxu3 %v2922_v16  ;;  %297 = vmatpush.msra.mxu2 %v2138_v23  ;;  %v1497_v23 = vadd.f32 %v2960_v11, %v3458_v31 }
 0x17d   :  { %1622 = vmatpush.msrb.mxu0 %v2081_v52  ;;  %1553 = vmatpush.msra.mxu1 %v2095_v15  ;;  %v2140_v52 = vld [vmem:[%s2344_s12 + $0x28] sm:$0xff] }
 0x17e   :  { %1223 = vmatpush.msra.mxu3 %v2935_v28  ;;  %v3090_v28 = vld [vmem:[%s3444_s17] sm:$0x1f] }
 0x17f   :  { %1623 = vmatpush.msrb.mxu0 %v2083_v50  ;;  %1554 = vmatpush.msra.mxu1 %v2097_v19 }
 0x180   :  { %1224 = vmatpush.msra.mxu3 %v2944_v22 }
 0x181   :  { %1624 = vmatpush.msrb.mxu0 %v2085_v43  ;;  %1555 = vmatpush.msra.mxu1 %v2099_v5  ;;  %v1503_v43 = vadd.f32 %v2960_v11, %v3452_v48 }
 0x182   :  { %1225 = vmatpush.msra.mxu3 %v2954_v29 }
 0x183   :  { %1625 = vmatpush.msrb.mxu0 %v2087_v62  ;;  %1556 = vmatpush.msra.mxu1 %v2101_v34  ;;  %v3454_v62 = vld [vmem:[#allocation38_spill] sm:$0xff] }
 0x184   :  { %1557 = vmatmul.f32.vlgmr.msra.gmra.mxu1 %v3020_v58  ;;  %v2139_v58 = vld [vmem:[%s2344_s12 + $0x30] sm:$0xff]  ;;  %v1501_v33 = vadd.f32 %v2960_v11, %v3454_v62 }
 0x185   :  { %1626 = vmatpush.msrb.mxu0 %v2089_v49  ;;  %298 = vmatpush.msra.mxu2 %v2139_v58  ;;  %v3455_v49 = vld [vmem:[#allocation42_spill] sm:$0xff]  ;;  %v3459_v58 = vld [vmem:[#allocation53_spill] sm:$0xff] }
 0x186   :  { %v1500_v44 = vadd.f32 %v2960_v11, %v3455_v49 }
 0x187   :  { %1627 = vmatpush.msrb.mxu0 %v2091_v37  ;;  %299 = vmatpush.msra.mxu2 %v2140_v52  ;;  %v1395_v52 = vmul.f32 %v2480_v9, %v3459_v58 }
 0x189   :  { %1628 = vmatpush.msrb.mxu0 %v2093_v10  ;;  %300 = vmatpush.msra.mxu2 %v2141_v63  ;;  %v1499_v10 = vadd.f32 %v2960_v11, %v3456_v3 }
 0x18b   :  { %1629 = vmatpush.msrb.mxu0 %v2095_v15  ;;  %301 = vmatpush.msra.mxu2 %v2711_v7  ;;  %v470_v7 = vrot.slane %v3090_v28, 1 }
 0x18c   :  { %1560 = vmatmul.f32.gmra.mxu1 %v668_v32  ;;  %v1504_v32 = vadd.f32 %v2960_v11, %v3451_v46  ;;  %v253_v46 = vld [vmem:[%s3466_s19] sm:$0x3] }
 0x18d   :  { %1630 = vmatpush.msrb.mxu0 %v2097_v19  ;;  %302 = vmatpush.msra.mxu2 %v2726_v30  ;;  %v3457_v19 = vld [vmem:[#allocation44_spill] sm:$0xff]  ;;  %v255_v62 = vperm.slane %v253_v46, 0 }
 0x18f   :  { %1631 = vmatpush.msrb.mxu0 %v2099_v5  ;;  %303 = vmatpush.msra.mxu2 %v2733_v40  ;;  %v1498_v5 = vadd.f32 %v2960_v11, %v3457_v19 }
 0x191   :  { %1632 = vmatpush.msrb.mxu0 %v2101_v34  ;;  %304 = vmatpush.msra.mxu2 %v2737_v51 }
 0x1b3   :  { %v399_v16 = vpop.f32.mrf.mxu1 }
 0x1b4   :  { %v3093_v22 = vadd.f32 %v399_v16, %v3090_v28  ;;  %v3460_v16 = vld [vmem:[#allocation47_spill] sm:$0xff] }
 0x1b6   :  { %403 = vst.msk [vmem:[#allocation5] sm:$0x1] %vm402_vm2, %v3093_v22 }
 0x1bb   :  { %v547_v20 = vpop.f32.mrf.mxu1 }
 0x1bc   :  { %1900 = vmatmul.msk.f32.vlgmr.msrb.gmra.mxu3 %vm175_vm1, %v547_v20  ;;  %v1496_v20 = vadd.f32 %v2960_v11, %v3460_v16 }
 0x1bd   :  { %1256 = vmatpush.msrb.mxu3 %v2825_v61 }
 0x1bf   :  { %1257 = vmatpush.msrb.mxu3 %v2832_v18  ;;  %v239_v18 = vld [vmem:[%s2344_s12 + $0x98] sm:$0xff] }
 0x1c0   :  { %321 = vmatpush.msrb.mxu2 %v239_v18  ;;  %1681 = vmatpush.msrb.mxu1 %v239_v18 }
 0x1c1   :  { %1258 = vmatpush.msrb.mxu3 %v2842_v39  ;;  %v238_v39 = vld [vmem:[%s2344_s12 + $0x90] sm:$0xff] }
 0x1c2   :  { %322 = vmatpush.msrb.mxu2 %v238_v39  ;;  %1682 = vmatpush.msrb.mxu1 %v238_v39 }
 0x1c3   :  { %1259 = vmatpush.msrb.mxu3 %v2858_v57  ;;  %v3445_v57 = vld [vmem:[#allocation55_spill] sm:$0xff] }
 0x1c5   :  { %1260 = vmatpush.msrb.mxu3 %v2873_v60  ;;  %v492_v30 = vpop.f32.mrf.mxu0  ;;  %v237_v60 = vld [vmem:[%s2344_s12 + $0x88] sm:$0xff] }
 0x1c6   :  { %v3104_v40 = vadd.f32 %v492_v30, %v470_v7  ;;  %323 = vmatpush.msrb.mxu2 %v237_v60  ;;  %1683 = vmatpush.msrb.mxu1 %v237_v60  ;;  %v3461_v7 = vld [vmem:[#allocation54_spill] sm:$0xff] }
 0x1c7   :  { %1261 = vmatpush.msrb.mxu3 %v2880_v0  ;;  %v236_v0 = vld [vmem:[%s2344_s12 + $0x80] sm:$0xff]  ;;  %v1428_v30 = vmul.f32 %v2486_v13, %v3461_v7  ;;  %s3486_s12 = sld [smem:[#allocation17_spill]] }
 0x1c8   :  { %495 = vst.msk [vmem:[#allocation6] sm:$0x1] %vm402_vm2, %v3104_v40  ;;  %324 = vmatpush.msrb.mxu2 %v236_v0  ;;  %1684 = vmatpush.msrb.mxu1 %v236_v0  ;;  %v3469_v7 = vld [vmem:[#allocation23_spill] sm:$0xff] }
 0x1c9   :  { %1262 = vmatpush.msrb.mxu3 %v2883_v47  ;;  %v1460_v9 = vadd.f32 %v1428_v30, %v1395_v52 }
 0x1cb   :  { %1263 = vmatpush.msrb.mxu3 %v2889_v4 }
 0x1cd   :  { %1264 = vmatpush.msrb.mxu3 %v2902_v6 }
 0x1ce   :  { %v217_v51 = vpop.permute.xlu1 %216 }
 0x1cf   :  { %1265 = vmatpush.msrb.mxu3 %v2895_v14  ;;  %v219_v61 = vadd.f32 %v217_v51, %v2870_v36 }
 0x1d1   :  { %1266 = vmatpush.msrb.mxu3 %v2906_v45  ;;  %243 = vperm.xlu2 %1982, %v219_v61   ;;  %v3462_v61 = vld [vmem:[#allocation50_spill] sm:$0xff] }
 0x1d3   :  { %1267 = vmatpush.msrb.mxu3 %v2924_v41  ;;  %v3447_v41 = vld [vmem:[#allocation25_spill] sm:$0xff] }
 0x1d5   :  { %1268 = vmatpush.msrb.mxu3 %v2937_v56  ;;  %v1508_v56 = vadd.f32 %v2960_v11, %v3447_v41  ;;  %v261_v41 = vld [vmem:[%s3464_s29] sm:$0xf] }
 0x1d7   :  { %1269 = vmatpush.msrb.mxu3 %v3445_v57  ;;  %2102 = vtanh.f32 %v1508_v56  ;;  %v1494_v57 = vadd.f32 %v2960_v11, %v2968_v35  ;;  %v416_v56 = vmul.f32 %v3093_v22, %v3093_v22 }
 0x1d9   :  { %1270 = vmatpush.msrb.mxu3 %v2992_v25  ;;  %v3448_v25 = vld [vmem:[#allocation28_spill] sm:$0xff] }
 0x1da   :  { %v1507_v12 = vadd.f32 %v2960_v11, %v3448_v25  ;;  %v263_v25 = vperm.slane %v261_v41, 0 }
 0x1db   :  { %1271 = vmatpush.msrb.mxu3 %v3000_v54  ;;  %v3449_v54 = vld [vmem:[#allocation30_spill] sm:$0xff] }
 0x1dc   :  { %v1506_v50 = vadd.f32 %v2960_v11, %v3449_v54  ;;  %2104 = vtanh.f32 %v1507_v12  ;;  %v240_v12 = vld [vmem:[%s3465_s14] sm:$0x3]  ;;  %v264_v54 = vperm.slane %v261_v41, 2  ;;  %v267_v17 = vperm.slane %v263_v25, 0 }
 0x1dd   :  { %v3139_v8 = vpop.eup %2102  ;;  %v247_v48 = vperm.slane %v240_v12, 0 }
 0x1de   :  { %2106 = vtanh.f32 %v1506_v50  ;;  %v417_v50 = vsel %vm402_vm2, %v416_v56, 0.0 }
 0x1df   :  { %2108 = vtanh.f32 %v1505_v21  ;;  %v273_v21 = vperm.slane %v261_v41, 1  ;;  %418 = vadd.xlane.f32.xlu0 %v417_v50 }
 0x1e0   :  { %2110 = vtanh.f32 %v1504_v32  ;;  %v274_v32 = vperm.slane %v261_v41, 3  ;;  %v576_v41 = vld [vmem:[%s3467_s24 + $0x1] sm:$0x1] }
 0x1e1   :  { %v1197_v47 = vpop.f32.mrf.mxu1  ;;  %2112 = vtanh.f32 %v1503_v43  ;;  %v248_v43 = vperm.slane %v240_v12, 1 }
 0x1e2   :  { %v3145_v26 = vpop.eup %2104  ;;  %2114 = vtanh.f32 %v1502_v38  ;;  %v496_v38 = vld [vmem:[%s3467_s24] sm:$0x1] }
 0x1e3   :  { %2116 = vtanh.f32 %v1501_v33  ;;  %v256_v33 = vperm.slane %v253_v46, 1  ;;  %v497_v49 = vmul.f32 %v496_v38, %v3104_v40  ;;  %v3473_v46 = vld [vmem:[#allocation33_spill] sm:$0xff]  ;;  %v3477_v38 = vld [vmem:[#allocation40_spill] sm:$0xff] }
 0x1e4   :  { %v3150_v27 = vpop.eup %2106  ;;  %2118 = vtanh.f32 %v1500_v44  ;;  %v277_v44 = vperm.slane %v273_v21, 1 }
 0x1e5   :  { %v3155_v1 = vpop.eup %2108  ;;  %2120 = vtanh.f32 %v1499_v10  ;;  %v278_v10 = vperm.slane %v274_v32, 1  ;;  %v498_v31 = vsel %vm402_vm2, %v497_v49, 0.0  ;;  %v3243_v32 = vld [vmem:[%s3446_s21 + $0x18] sm:$0xff] }
 0x1e6   :  { %v3160_v37 = vpop.eup %2110  ;;  %2122 = vtanh.f32 %v1498_v5  ;;  %499 = vadd.xlane.f32.xlu1 %v498_v31  ;;  %v279_v30 = vmul.f32 %v277_v44, %v3469_v7  ;;  %v3481_v49 = vld [vmem:[#allocation49_spill] sm:$0xff]  ;;  %v3482_v44 = vld [vmem:[#allocation51_spill] sm:$0xff] }
 0x1e7   :  { %v1174_v4 = vpop.f32.mrf.mxu0  ;;  %v3165_v15 = vpop.eup %2112  ;;  %2124 = vtanh.f32 %v1497_v23  ;;  %v3468_v23 = vld [vmem:[#allocation24_spill] sm:$0xff] }
 0x1e8   :  { %v1198_v14 = vadd.f32 %v1197_v47, %v1174_v4  ;;  %v3170_v34 = vpop.eup %2114  ;;  %2126 = vtanh.f32 %v1496_v20  ;;  %v269_v58 = vmul.f32 %v267_v17, %v3468_v23  ;;  %v3476_v17 = vld [vmem:[#allocation39_spill] sm:$0xff] }
 0x1e9   :  { %v1200_v6 = vpop.f32.mrf.mxu1  ;;  %v3177_v63 = vpop.eup %2116 }
 0x1ea   :  { %1901 = vmatmul.msk.f32.vlgmr.msra.gmra.mxu3 %vm175_vm1, %v1198_v14  ;;  %v3184_v51 = vpop.eup %2118  ;;  %v404_v14 = vld [vmem:[%s3463_s25] sm:$0x1] }
 0x1eb   :  { %1606 = vmatpush.msra.mxu3 %v239_v18  ;;  %v1495_v18 = vadd.f32 %v2960_v11, %v3462_v61  ;;  %v280_v61 = vmul.f32 %v278_v10, %v3469_v7  ;;  %v3258_v10 = vld [vmem:[%s3446_s21] sm:$0xff] }
 0x1ed   :  { %1607 = vmatpush.msra.mxu3 %v238_v39  ;;  %v3189_v39 = vpop.eup %2120  ;;  %2128 = vtanh.f32 %v1495_v18 }
 0x1ee   :  { %v3194_v13 = vpop.eup %2122  ;;  %2130 = vtanh.f32 %v1494_v57 }
 0x1ef   :  { %1608 = vmatpush.msra.mxu3 %v237_v60  ;;  %v1177_v45 = vpop.f32.mrf.mxu0  ;;  %v1493_v60 = vadd.f32 %v2960_v11, %v1460_v9 }
 0x1f0   :  { %v1201_v29 = vadd.f32 %v1200_v6, %v1177_v45  ;;  %v405_v6 = vmul.f32 %v404_v14, %v3093_v22  ;;  %v268_v22 = vperm.slane %v264_v54, 0  ;;  %v3472_v54 = vld [vmem:[#allocation31_spill] sm:$0xff] }
 0x1f1   :  { %1609 = vmatpush.msra.mxu3 %v236_v0  ;;  %v3198_v0 = vpop.eup %2124  ;;  %2132 = vtanh.f32 %v1493_v60  ;;  %v550_v60 = vrot.slane %v3090_v28, 2 }
 0x1f2   :  { %1902 = vmatmul.msk.f32.gmra.mxu3 %vm175_vm1, %v1201_v29  ;;  %v3201_v47 = vpop.eup %2126  ;;  %v406_v45 = vsel %vm402_vm2, %v405_v6, 0.0  ;;  %v508_v29 = vmul.f32 %v3104_v40, %v3104_v40  ;;  %v270_v52 = vmul.f32 %v268_v22, %v3468_v23  ;;  %v3470_v6 = vld [vmem:[#allocation27_spill] sm:$0xff]  ;;  %v3299_v23 = vpop.permute.xlu0 %1779 }
 0x1f3   :  { %v3204_v35 = vpop.eup %2128  ;;  %v3478_v22 = vld [vmem:[#allocation43_spill] sm:$0xff] }
 0x1f4   :  { %v3207_v4 = vpop.eup %2130  ;;  %v509_v53 = vsel %vm402_vm2, %v508_v29, 0.0  ;;  %v3471_v29 = vld [vmem:[#allocation26_spill] sm:$0xff] }
 0x1f7   :  { %v3210_v11 = vpop.eup %2132 }
 0x1fa   :  { %1272 = vmatmul.f32.vlgmr.msrb.gmra.mxu3 %v3135_v55  ;;  %407 = vadd.xlane.f32.xlu2 %v406_v45 }
 0x1fb   :  { %1640 = vmatpush.msrb.mxu3 %v3139_v8 }
 0x1fd   :  { %1641 = vmatpush.msrb.mxu3 %v3145_v26 }
 0x1ff   :  { %1642 = vmatpush.msrb.mxu3 %v3150_v27 }
 0x201   :  { %1643 = vmatpush.msrb.mxu3 %v3155_v1 }
 0x202   :  { %510 = vadd.xlane.f32.xlu2 %v509_v53  ;;  %1275 = vmatmul.f32.gmra.mxu3 %v3243_v32 }
 0x203   :  { %1644 = vmatpush.msrb.mxu3 %v3160_v37 }
 0x205   :  { %1645 = vmatpush.msrb.mxu3 %v3165_v15 }
 0x207   :  { %1646 = vmatpush.msrb.mxu3 %v3170_v34 }
 0x209   :  { %1647 = vmatpush.msrb.mxu3 %v3177_v63 }
 0x20b   :  { %1648 = vmatpush.msrb.mxu3 %v3184_v51 }
 0x20d   :  { %1649 = vmatpush.msrb.mxu3 %v3189_v39 }
 0x20f   :  { %1650 = vmatpush.msrb.mxu3 %v3194_v13 }
 0x211   :  { %1651 = vmatpush.msrb.mxu3 %v3198_v0 }
 0x213   :  { %1652 = vmatpush.msrb.mxu3 %v3201_v47 }
 0x215   :  { %1653 = vmatpush.msrb.mxu3 %v3204_v35 }
 0x217   :  { %1654 = vmatpush.msrb.mxu3 %v3207_v4 }
 0x219   :  { %1655 = vmatpush.msrb.mxu3 %v3210_v11 }
 0x22b   :  { %v244_v3 = vpop.permute.xlu2 %243 }
 0x22c   :  { %v251_v19 = vmul.f32 %v247_v48, %v244_v3  ;;  %v252_v5 = vmul.f32 %v248_v43, %v244_v3  ;;  %v3474_v48 = vld [vmem:[#allocation34_spill] sm:$0xff]  ;;  %v3475_v43 = vld [vmem:[#allocation37_spill] sm:$0xff]  ;;  %v3483_v3 = vld [vmem:[#allocation52_spill] sm:$0xff] }
 0x22e   :  { %v259_v16 = vadd.f32 %v255_v62, %v251_v19  ;;  %v260_v20 = vadd.f32 %v256_v33, %v252_v5  ;;  %v3479_v62 = vld [vmem:[#allocation45_spill] sm:$0xff]  ;;  %v3480_v33 = vld [vmem:[#allocation46_spill] sm:$0xff] }
 0x22f   :  { %v3266_v19 = vld [vmem:[%s3446_s21 + $0x10] sm:$0xff] }
 0x230   :  { %v271_v40 = vadd.f32 %v269_v58, %v259_v16  ;;  %v272_v18 = vadd.f32 %v270_v52, %v260_v20  ;;  %v3301_v58 = vpop.permute.xlu1 %1787 }
 0x232   :  { %v282_v9 = vadd.f32 %v280_v61, %v272_v18  ;;  %v281_v57 = vadd.f32 %v279_v30, %v271_v40 }
 0x234   :  { %2134 = vtanh.f32 %v281_v57 }
 0x235   :  { %2136 = vtanh.f32 %v282_v9 }
 0x23a   :  { %v2135_v14 = vpop.eup %2134 }
 0x23b   :  { %305 = vmatmul.f32.vlgmr.msra.gmra.mxu2 %v2135_v14  ;;  %v2137_v21 = vpop.eup %2136 }
 0x23c   :  { %1233 = vmatpush.msra.mxu2 %v3470_v6 }
 0x23e   :  { %1234 = vmatpush.msra.mxu2 %v3471_v29 }
 0x23f   :  { %v572_v45 = vpop.f32.mrf.mxu3 }
 0x240   :  { %v573_v56 = vadd.f32 %v572_v45, %v550_v60  ;;  %1235 = vmatpush.msra.mxu2 %v3472_v54 }
 0x242   :  { %575 = vst.msk [vmem:[#allocation6 + $0x1] sm:$0x1] %vm402_vm2, %v573_v56  ;;  %v588_v25 = vmul.f32 %v573_v56, %v573_v56  ;;  %v577_v12 = vmul.f32 %v576_v41, %v573_v56  ;;  %1236 = vmatpush.msra.mxu2 %v3473_v46 }
 0x243   :  { %1894 = vmatmul.msk.f32.vlgmr.msrb.gmra.mxu2 %vm175_vm1, %v2137_v21 }
 0x244   :  { %v589_v50 = vsel %vm402_vm2, %v588_v25, 0.0  ;;  %v578_v53 = vsel %vm402_vm2, %v577_v12, 0.0  ;;  %1237 = vmatpush.msra.mxu2 %v3474_v48 }
 0x245   :  { %590 = vadd.xlane.f32.xlu0 %v589_v50  ;;  %579 = vadd.xlane.f32.xlu2 %v578_v53 }
 0x246   :  { %1238 = vmatpush.msra.mxu2 %v3475_v43 }
 0x248   :  { %1239 = vmatpush.msra.mxu2 %v3476_v17 }
 0x24a   :  { %1240 = vmatpush.msra.mxu2 %v3477_v38 }
 0x24c   :  { %1241 = vmatpush.msra.mxu2 %v3478_v22 }
 0x24e   :  { %1242 = vmatpush.msra.mxu2 %v3479_v62 }
 0x250   :  { %1243 = vmatpush.msra.mxu2 %v3480_v33 }
 0x252   :  { %1244 = vmatpush.msra.mxu2 %v3481_v49 }
 0x254   :  { %1245 = vmatpush.msra.mxu2 %v3482_v44 }
 0x256   :  { %1246 = vmatpush.msra.mxu2 %v3483_v3 }
 0x258   :  { %1247 = vmatpush.msra.mxu2 %v2973_v24  ;;  %v3273_v24 = vperm.slane %v3090_v28, 3 }
 0x25a   :  { %1248 = vmatpush.msra.mxu2 %v3022_v2 }
 0x25b   :  { %1249 = vmatmul.f32.vlgmr.msra.gmra.mxu2 %v3258_v10 }
 0x25c   :  { %1564 = vmatpush.msrb.mxu2 %v3139_v8 }
 0x25e   :  { %1565 = vmatpush.msrb.mxu2 %v3145_v26  ;;  %v1312_v26 = vld [vmem:[%s3484_s30] sm:$0xff] }
 0x260   :  { %1566 = vmatpush.msrb.mxu2 %v3150_v27 }
 0x262   :  { %1567 = vmatpush.msrb.mxu2 %v3155_v1 }
 0x263   :  { %1252 = vmatmul.f32.gmra.mxu2 %v3266_v19 }
 0x264   :  { %1568 = vmatpush.msrb.mxu2 %v3160_v37 }
 0x266   :  { %1569 = vmatpush.msrb.mxu2 %v3165_v15  ;;  %v1313_v15 = vld [vmem:[%s3484_s30 + $0x8] sm:$0xff] }
 0x268   :  { %1570 = vmatpush.msrb.mxu2 %v3170_v34 }
 0x26a   :  { %1571 = vmatpush.msrb.mxu2 %v3177_v63 }
 0x26c   :  { %1572 = vmatpush.msrb.mxu2 %v3184_v51 }
 0x26d   :  { %v1227_v2 = vpop.f32.mrf.mxu3 }
 0x26e   :  { %v1228_v8 = vadd.f32 %v1227_v2, %v3273_v24  ;;  %1573 = vmatpush.msrb.mxu2 %v3189_v39 }
 0x270   :  { %1308 = vst.msk [vmem:[%s2394_s27] sm:$0xff] %vm126_vm0, %v1228_v8  ;;  %1574 = vmatpush.msrb.mxu2 %v3194_v13  ;;  %v1314_v27 = vmul.f32 %v1312_v26, %v1228_v8  ;;  %v1328_v1 = vmul.f32 %v1228_v8, %v1228_v8 }
 0x272   :  { %1575 = vmatpush.msrb.mxu2 %v3198_v0  ;;  %v1316_v51 = vsel %vm126_vm0, %v1314_v27, 0.0  ;;  %v1330_v13 = vsel %vm126_vm0, %v1328_v1, 0.0 }
 0x274   :  { %1576 = vmatpush.msrb.mxu2 %v3201_v47 }
 0x275   :  { %v1230_v37 = vpop.f32.mrf.mxu3 }
 0x276   :  { %v1231_v34 = vadd.f32 %v1230_v37, %v3273_v24  ;;  %1577 = vmatpush.msrb.mxu2 %v3204_v35  ;;  %v408_v35 = vpop.xlane.xlu2 %407 }
 0x277   :  { %v409_v16 = vrot.slane %v408_v35, 4 }
 0x278   :  { %1309 = vst.msk [vmem:[%s2394_s27 + $0x8] sm:$0xff] %vm126_vm0, %v1231_v34  ;;  %v1315_v63 = vmul.f32 %v1313_v15, %v1231_v34  ;;  %v1329_v39 = vmul.f32 %v1231_v34, %v1231_v34  ;;  %1578 = vmatpush.msrb.mxu2 %v3207_v4  ;;  %v419_v4 = vpop.xlane.xlu0 %418 }
 0x279   :  { %v420_v20 = vrot.slane %v419_v4, 4  ;;  %v410_v30 = vadd.f32 %v409_v16, %v408_v35 }
 0x27a   :  { %v1317_v0 = vsel %vm126_vm0, %v1315_v63, 0.0  ;;  %v1331_v5 = vsel %vm126_vm0, %v1329_v39, 0.0  ;;  %1579 = vmatpush.msrb.mxu2 %v3210_v11  ;;  %v500_v11 = vpop.xlane.xlu1 %499 }
 0x27b   :  { %v1318_v31 = vadd.f32 %v1317_v0, %v1316_v51  ;;  %v1332_v47 = vadd.f32 %v1331_v5, %v1330_v13  ;;  %1580 = vmatmul.f32.vlgmr.msrb.gmra.mxu2 %v3003_v59  ;;  %v421_v61 = vadd.f32 %v420_v20, %v419_v4  ;;  %v501_v18 = vrot.slane %v500_v11, 4 }
 0x27c   :  { %v411_v9 = vrot.slane %v410_v30, 2 }
 0x27d   :  { %1319 = vadd.xlane.f32.xlu1 %v1318_v31  ;;  %1333 = vadd.xlane.f32.xlu2 %v1332_v47  ;;  %v502_v59 = vadd.f32 %v501_v18, %v500_v11  ;;  %v422_v57 = vrot.slane %v421_v61, 2  ;;  %v1273_v15 = vpop.f32.mrf.mxu3  ;;  %v1558_v11 = vpop.f32.mrf.mxu1 }
 0x27e   :  { %v511_v52 = vpop.xlane.xlu2 %510  ;;  %v412_v14 = vadd.f32 %v411_v9, %v410_v30 }
 0x27f   :  { %v512_v7 = vrot.slane %v511_v52, 4  ;;  %v423_v6 = vadd.f32 %v422_v57, %v421_v61 }
 0x280   :  { %v413_v56 = vrot.slane %v412_v14, 1 }
 0x281   :  { %v513_v40 = vadd.f32 %v512_v7, %v511_v52  ;;  %v424_v29 = vrot.slane %v423_v6, 1 }
 0x282   :  { %v414_v54 = vadd.f32 %v413_v56, %v412_v14  ;;  %v1345_v14 = vld [vmem:[%s3485_s6] sm:$0xff]  ;;  %v1346_v56 = vld [vmem:[%s3485_s6 + $0x8] sm:$0xff] }
 0x283   :  { %1583 = vmatmul.f32.gmra.mxu2 %v3038_v42  ;;  %v514_v60 = vrot.slane %v513_v40, 2  ;;  %v503_v42 = vrot.slane %v502_v59, 2  ;;  %v425_v50 = vadd.f32 %v424_v29, %v423_v6 }
 0x284   :  { %1910 = vpush %v414_v54 }
 0x285   :  { %v504_v45 = vadd.f32 %v503_v42, %v502_v59  ;;  %v515_v41 = vadd.f32 %v514_v60, %v513_v40  ;;  %1912 = vpush %v425_v50  ;;  %v1276_v51 = vpop.f32.mrf.mxu3 }
 0x287   :  { %v505_v25 = vrot.slane %v504_v45, 1  ;;  %v516_v12 = vrot.slane %v515_v41, 1 }
 0x289   :  { %v506_v53 = vadd.f32 %v505_v25, %v504_v45  ;;  %v517_v21 = vadd.f32 %v516_v12, %v515_v41 }
 0x28b   :  { %1914 = vpush %v506_v53 }
 0x28c   :  { %1916 = vpush %v517_v21 }
 0x2b8   :  { %v591_v46 = vpop.xlane.xlu0 %590  ;;  %v580_v43 = vpop.xlane.xlu2 %579 }
 0x2b9   :  { %v592_v48 = vrot.slane %v591_v46, 4  ;;  %v581_v17 = vrot.slane %v580_v43, 4 }
 0x2bb   :  { %v593_v38 = vadd.f32 %v592_v48, %v591_v46  ;;  %v582_v22 = vadd.f32 %v581_v17, %v580_v43  ;;  %v1985_v46 = vld [vmem:[%s3486_s12] ss:$0 sm:$0xff] }
 0x2bd   :  { %v594_v62 = vrot.slane %v593_v38, 2  ;;  %v583_v33 = vrot.slane %v582_v22, 2 }
 0x2be   :  { %v306_v3 = vpop.f32.mrf.mxu2 }
 0x2bf   :  { %v595_v49 = vadd.f32 %v594_v62, %v593_v38  ;;  %v584_v44 = vadd.f32 %v583_v33, %v582_v22  ;;  %v1696_v38 = vld [vmem:[%s3484_s30 + $0x10] sm:$0xff]  ;;  %v2142_v22 = vld [vmem:[%s2254_s5] sm:$0xff]  ;;  %s2243_s5 = smov [#allocation5]  }
 0x2c1   :  { %v596_v2 = vrot.slane %v595_v49, 1  ;;  %v585_v8 = vrot.slane %v584_v44, 1 }
 0x2c3   :  { %v597_v26 = vadd.f32 %v596_v2, %v595_v49  ;;  %v586_v27 = vadd.f32 %v585_v8, %v584_v44  ;;  %v1697_v49 = vld [vmem:[%s3484_s30 + $0x18] sm:$0xff] }
 0x2c5   :  { %1918 = vpush %v586_v27 }
 0x2c6   :  { %1920 = vpush %v597_v26  ;;  %v326_v1 = vpop.f32.mrf.mxu2 }
 0x2c7   :  { %v327_v37 = vadd.f32 %v326_v1, %v306_v3 }
 0x2c9   :  { %v332_v17 = vadd.f32 %v1985_v46, %v327_v37  ;;  %v1729_v46 = vld [vmem:[%s3485_s6 + $0x10] sm:$0xff] }
 0x2cb   :  { %v1762_v62 = vsub.f32 %v2142_v22, %v332_v17 }
 0x2cd   :  { %v1763_v26 = vmul.f32 0.5, %v1762_v62 }
 0x2de   :  { %v1250_v34 = vpop.f32.mrf.mxu2 }
 0x2df   :  { %v1274_v63 = vadd.f32 %v1273_v15, %v1250_v34 }
 0x2e1   :  { %1903 = vmatmul.msk.f32.vlgmr.msra.gmra.mxu0 %vm175_vm1, %v1274_v63 }
 0x2e6   :  { %v1253_v39 = vpop.f32.mrf.mxu2 }
 0x2e7   :  { %v1277_v13 = vadd.f32 %v1276_v51, %v1253_v39  ;;  %v1764_v39 = vmul.f32 %v1763_v26, %v1762_v62  ;;  %v1776_v62 = vmul.f32 %v2870_v36, %v2870_v36 }
 0x2e9   :  { %1904 = vmatmul.msk.f32.gmra.mxu0 %vm175_vm1, %v1277_v13 }
 0x2f0   :  { %v1320_v0 = vpop.xlane.xlu1 %1319  ;;  %v1334_v5 = vpop.xlane.xlu2 %1333 }
 0x2f1   :  { %v1321_v31 = vrot.slane %v1320_v0, 4  ;;  %v1335_v47 = vrot.slane %v1334_v5, 4  ;;  %1633 = vmatmul.f32.vlgmr.msrb.gmra.mxu0 %v3258_v10  ;;  %v1561_v10 = vpop.f32.mrf.mxu1 }
 0x2f3   :  { %v1322_v35 = vadd.f32 %v1321_v31, %v1320_v0  ;;  %v1336_v4 = vadd.f32 %v1335_v47, %v1334_v5  ;;  %v1765_v5 = vadd.f32 0.9189385, %v1764_v39 }
 0x2f5   :  { %v1323_v52 = vrot.slane %v1322_v35, 2  ;;  %v1337_v16 = vrot.slane %v1336_v4, 2  ;;  %v1766_v47 = vsel %vm126_vm0, %v1765_v5, 0.0 }
 0x2f7   :  { %v1324_v20 = vadd.f32 %v1323_v52, %v1322_v35  ;;  %v1338_v7 = vadd.f32 %v1337_v16, %v1336_v4 }
 0x2f9   :  { %v1325_v30 = vrot.slane %v1324_v20, 1  ;;  %v1339_v61 = vrot.slane %v1338_v7, 1  ;;  %1636 = vmatmul.f32.gmra.mxu0 %v3266_v19 }
 0x2fb   :  { %v1326_v40 = vadd.f32 %v1325_v30, %v1324_v20  ;;  %v1340_v18 = vadd.f32 %v1339_v61, %v1338_v7 }
 0x2fd   :  { %1922 = vpush %v1326_v40 }
 0x2fe   :  { %1924 = vpush %v1340_v18  ;;  %v1581_v59 = vpop.f32.mrf.mxu2 }
 0x2ff   :  { %v1582_v9 = vadd.f32 %v1581_v59, %v1558_v11 }
 0x301   :  { %1905 = vmatmul.msk.f32.vlgmr.msra.gmra.mxu3 %vm175_vm1, %v1582_v9 }
 0x306   :  { %v1584_v57 = vpop.f32.mrf.mxu2 }
 0x307   :  { %v1585_v60 = vadd.f32 %v1584_v57, %v1561_v10 }
 0x309   :  { %1906 = vmatmul.msk.f32.gmra.mxu3 %vm175_vm1, %v1585_v60 }
 0x311   :  { %1656 = vmatmul.f32.vlgmr.msrb.gmra.mxu3 %v3135_v55 }
 0x319   :  { %1659 = vmatmul.f32.gmra.mxu3 %v3243_v32 }
 0x35e   :  { %v1302_v19 = vpop.f32.mrf.mxu0 }
 0x35f   :  { %v1303_v42 = vadd.f32 %v1302_v19, %v3273_v24 }
 0x361   :  { %1310 = vst.msk [vmem:[%s2399_s8] sm:$0xff] %vm126_vm0, %v1303_v42  ;;  %v1361_v6 = vmul.f32 %v1303_v42, %v1303_v42  ;;  %v1347_v45 = vmul.f32 %v1345_v14, %v1303_v42 }
 0x363   :  { %v1363_v55 = vsel %vm126_vm0, %v1361_v6, 0.0  ;;  %v1349_v12 = vsel %vm126_vm0, %v1347_v45, 0.0 }
 0x366   :  { %v1305_v41 = vpop.f32.mrf.mxu0 }
 0x367   :  { %v1306_v29 = vadd.f32 %v1305_v41, %v3273_v24  ;;  %v3324_v24 = vperm.slane %v3090_v28, 4 }
 0x369   :  { %1311 = vst.msk [vmem:[%s2399_s8 + $0x8] sm:$0xff] %vm126_vm0, %v1306_v29  ;;  %v1362_v25 = vmul.f32 %v1306_v29, %v1306_v29  ;;  %v1348_v32 = vmul.f32 %v1346_v56, %v1306_v29 }
 0x36b   :  { %v1364_v54 = vsel %vm126_vm0, %v1362_v25, 0.0  ;;  %v1350_v50 = vsel %vm126_vm0, %v1348_v32, 0.0 }
 0x36c   :  { %v1365_v53 = vadd.f32 %v1364_v54, %v1363_v55  ;;  %v1351_v21 = vadd.f32 %v1350_v50, %v1349_v12 }
 0x36e   :  { %1366 = vadd.xlane.f32.xlu1 %v1365_v53  ;;  %1352 = vadd.xlane.f32.xlu0 %v1351_v21  ;;  %v1634_v27 = vpop.f32.mrf.mxu0 }
 0x376   :  { %v1637_v31 = vpop.f32.mrf.mxu0 }
 0x384   :  { %v1611_v48 = vpop.f32.mrf.mxu3 }
 0x385   :  { %v1612_v43 = vadd.f32 %v1611_v48, %v3324_v24 }
 0x387   :  { %1692 = vst.msk [vmem:[%s2394_s27 + $0x10] sm:$0xff] %vm126_vm0, %v1612_v43  ;;  %v1698_v3 = vmul.f32 %v1696_v38, %v1612_v43  ;;  %v1712_v2 = vmul.f32 %v1612_v43, %v1612_v43  ;;  %v1730_v43 = vld [vmem:[%s3485_s6 + $0x18] sm:$0xff] }
 0x389   :  { %v1700_v1 = vsel %vm126_vm0, %v1698_v3, 0.0  ;;  %v1714_v15 = vsel %vm126_vm0, %v1712_v2, 0.0 }
 0x38c   :  { %v1614_v33 = vpop.f32.mrf.mxu3 }
 0x38d   :  { %v1615_v44 = vadd.f32 %v1614_v33, %v3324_v24 }
 0x38f   :  { %1693 = vst.msk [vmem:[%s2394_s27 + $0x18] sm:$0xff] %vm126_vm0, %v1615_v44  ;;  %v1699_v28 = vmul.f32 %v1697_v49, %v1615_v44  ;;  %v1713_v8 = vmul.f32 %v1615_v44, %v1615_v44  ;;  %v1782_v44 = vadd.f32 %v3299_v23, %v1776_v62  ;;  %s1824_s27 = sshll.u32 %s2384_s3, 4  ;;  %s1825_s27 = int_to_ptr.hbm [resolvable:$true] %s1824_s27 }
 0x390   :  { %s2155_s4 = sshra.s32 %s1825_s27, 4  ;;  %s2156_s4 = int_to_ptr.hbm [resolvable:$true] %s2155_s4 }
 0x391   :  { %v1701_v37 = vsel %vm126_vm0, %v1699_v28, 0.0  ;;  %v1715_v34 = vsel %vm126_vm0, %v1713_v8, 0.0  ;;  %s2157_s7 = scalar_lea.hbm %s2156_s4, 1  ;;  %p2160_p1 = scmp.lt.s32.totalorder %s2156_s4, %s2384_s3 }
 0x392   :  { %v1702_v63 = vadd.f32 %v1701_v37, %v1700_v1  ;;  %v1716_v51 = vadd.f32 %v1715_v34, %v1714_v15  ;;  %p2158_p0 = scmp.ne.s32.totalorder %s2156_s4, %s2157_s7  ;;  %p2161_p2 = scmp.lt.s32.totalorder %s2159_s10, %s2157_s7 }
 0x394   :  { %v1657_v13 = vpop.f32.mrf.mxu3  ;;  %1703 = vadd.xlane.f32.xlu2 %v1702_v63  ;;  %1717 = vadd.xlane.f32.xlu0 %v1716_v51  ;;  %p2162_p3 = por %p2161_p2, %p2160_p1 }
 0x395   :  { %v1658_v0 = vadd.f32 %v1657_v13, %v1634_v27  ;;  %v1790_v27 = vsub.f32 %v1782_v44, %v3301_v58 }
 0x396   :  { %p2163_p4 = pnand %p2162_p3, %p2158_p0 }
 0x397   :  { %1907 = vmatmul.msk.f32.vlgmr.msrb.gmra.mxu1 %vm175_vm1, %v1658_v0  ;;  %v1909_v36 = vadd.f32 -1.0, %v1790_v27 }
 0x399   :  { %v1793_v23 = vsel %vm1792_vm3, %v1909_v36, 0.0 }
 0x39c   :  { %v1660_v35 = vpop.f32.mrf.mxu3  ;;  %1767 = vadd.xlane.f32.xlu0 %v1766_v47 }
 0x39d   :  { %v1661_v4 = vadd.f32 %v1660_v35, %v1637_v31 }
 0x39f   :  { %1908 = vmatmul.msk.f32.gmra.mxu1 %vm175_vm1, %v1661_v4 }
 0x3e1   :  { %v1353_v52 = vpop.xlane.xlu0 %1352  ;;  %v1367_v16 = vpop.xlane.xlu1 %1366 }
 0x3e2   :  { %v1354_v20 = vrot.slane %v1353_v52, 4  ;;  %v1368_v7 = vrot.slane %v1367_v16, 4 }
 0x3e4   :  { %v1355_v30 = vadd.f32 %v1354_v20, %v1353_v52  ;;  %v1369_v61 = vadd.f32 %v1368_v7, %v1367_v16 }
 0x3e6   :  { %v1356_v40 = vrot.slane %v1355_v30, 2  ;;  %v1370_v11 = vrot.slane %v1369_v61, 2 }
 0x3e8   :  { %v1357_v18 = vadd.f32 %v1356_v40, %v1355_v30  ;;  %v1371_v59 = vadd.f32 %v1370_v11, %v1369_v61 }
 0x3ea   :  { %v1358_v9 = vrot.slane %v1357_v18, 1  ;;  %v1372_v10 = vrot.slane %v1371_v59, 1 }
 0x3ec   :  { %v1359_v57 = vadd.f32 %v1358_v9, %v1357_v18  ;;  %v1373_v60 = vadd.f32 %v1372_v10, %v1371_v59 }
 0x3ee   :  { %1926 = vpush %v1359_v57 }
 0x3ef   :  { %1928 = vpush %v1373_v60 }
 0x407   :  { %v1718_v19 = vpop.xlane.xlu0 %1717  ;;  %v1704_v42 = vpop.xlane.xlu2 %1703 }
 0x408   :  { %v1719_v14 = vrot.slane %v1718_v19, 4  ;;  %v1705_v6 = vrot.slane %v1704_v42, 4 }
 0x40a   :  { %v1720_v45 = vadd.f32 %v1719_v14, %v1718_v19  ;;  %v1706_v41 = vadd.f32 %v1705_v6, %v1704_v42 }
 0x40c   :  { %v1721_v56 = vrot.slane %v1720_v45, 2  ;;  %v1707_v29 = vrot.slane %v1706_v41, 2 }
 0x40e   :  { %v1708_v25 = vadd.f32 %v1707_v29, %v1706_v41  ;;  %v1722_v55 = vadd.f32 %v1721_v56, %v1720_v45 }
 0x410   :  { %v1709_v32 = vrot.slane %v1708_v25, 1  ;;  %v1723_v12 = vrot.slane %v1722_v55, 1 }
 0x412   :  { %v1710_v54 = vadd.f32 %v1709_v32, %v1708_v25  ;;  %v1724_v50 = vadd.f32 %v1723_v12, %v1722_v55 }
 0x414   :  { %v1686_v53 = vpop.f32.mrf.mxu1  ;;  %1930 = vpush %v1710_v54 }
 0x415   :  { %v1687_v21 = vadd.f32 %v1686_v53, %v3324_v24  ;;  %1932 = vpush %v1724_v50 }
 0x417   :  { %1694 = vst.msk [vmem:[%s2399_s8 + $0x10] sm:$0xff] %vm126_vm0, %v1687_v21  ;;  %v1745_v38 = vmul.f32 %v1687_v21, %v1687_v21  ;;  %v1731_v22 = vmul.f32 %v1729_v46, %v1687_v21 }
 0x419   :  { %v1747_v3 = vsel %vm126_vm0, %v1745_v38, 0.0  ;;  %v1733_v28 = vsel %vm126_vm0, %v1731_v22, 0.0 }
 0x41c   :  { %v1689_v48 = vpop.f32.mrf.mxu1 }
 0x41d   :  { %v1690_v17 = vadd.f32 %v1689_v48, %v3324_v24 }
 0x41f   :  { %1695 = vst.msk [vmem:[%s2399_s8 + $0x18] sm:$0xff] %vm126_vm0, %v1690_v17  ;;  %v1746_v33 = vmul.f32 %v1690_v17, %v1690_v17  ;;  %v1732_v49 = vmul.f32 %v1730_v43, %v1690_v17  ;;  %s1822_s8 = sshll.u32 %s2243_s5, 4  ;;  %s1823_s8 = int_to_ptr.vmem [resolvable:$true] %s1822_s8 }
 0x421   :  { %v1748_v2 = vsel %vm126_vm0, %v1746_v33, 0.0  ;;  %v1734_v24 = vsel %vm126_vm0, %v1732_v49, 0.0 }
 0x422   :  { %v1749_v8 = vadd.f32 %v1748_v2, %v1747_v3  ;;  %v1735_v26 = vadd.f32 %v1734_v24, %v1733_v28 }
 0x424   :  { %1750 = vadd.xlane.f32.xlu2 %v1749_v8  ;;  %1736 = vadd.xlane.f32.xlu1 %v1735_v26 }
 0x42c   :  { %1794 = vadd.xlane.f32.xlu1 %v1793_v23 }
 0x42d   :  { %2166 = shalt.err (!%p2163_p4)
}
 0x42e   :  { %1827 = dma.vmem_to_hbm [thread:$0]  %s1823_s8, 16, %s1825_s27, [#allocation3]  }
 0x42f   :  { %s1835_s11 = sshll.u32 %s2389_s20, 4  ;;  %s2244_s15 = smov [#allocation6]   ;;  %s1836_s11 = int_to_ptr.hbm [resolvable:$true] %s1835_s11 }
 0x430   :  { %s1833_s16 = sshll.u32 %s2244_s15, 4  ;;  %s2179_s18 = sshra.s32 %s1836_s11, 4  ;;  %s1834_s16 = int_to_ptr.vmem [resolvable:$true] %s1833_s16  ;;  %s2180_s18 = int_to_ptr.hbm [resolvable:$true] %s2179_s18 }
 0x431   :  { %s2181_s22 = scalar_lea.hbm %s2180_s18, 2  ;;  %s2183_s23 = scalar_lea.hbm %s2389_s20, 2 }
 0x432   :  { %p2182_p5 = scmp.ne.s32.totalorder %s2180_s18, %s2181_s22  ;;  %p2184_p6 = scmp.lt.s32.totalorder %s2180_s18, %s2389_s20 }
 0x433   :  { %p2185_p7 = scmp.lt.s32.totalorder %s2183_s23, %s2181_s22 }
 0x435   :  { %p2186_p8 = por %p2185_p7, %p2184_p6 }
 0x437   :  { %p2187_p9 = pnand %p2186_p8, %p2182_p5 }
 0x439   :  { %2190 = shalt.err (!%p2187_p9)
}
 0x43a   :  { %1838 = dma.vmem_to_hbm [thread:$0]  %s1834_s16, 32, %s1836_s11, [#allocation7]   ;;  %v1768_v58 = vpop.xlane.xlu0 %1767 }
 0x43b   :  { %v1769_v1 = vrot.slane %v1768_v58, 4  ;;  %s1911_s3 = spop %1910  ;;  %s3487_s4 = sld [smem:[#allocation22_spill]] }
 0x43c   :  { %s1913_s20 = spop %1912 }
 0x43d   :  { %v1770_v37 = vadd.f32 %v1769_v1, %v1768_v58  ;;  %s1915_s26 = spop %1914  ;;  %s427_s1 = smul.f32 0.5, %s1913_s20 }
 0x43e   :  { %s1917_s28 = spop %1916 }
 0x43f   :  { %v1771_v63 = vrot.slane %v1770_v37, 2  ;;  %s519_s2 = smul.f32 0.5, %s1917_s28  ;;  %s1919_s0 = spop %1918 }
 0x440   :  { %s1921_s9 = spop %1920  ;;  %s428_s13 = sadd.f32 %s1911_s3, %s427_s1 }
 0x441   :  { %v1772_v5 = vadd.f32 %v1771_v63, %v1770_v37  ;;  %s520_s17 = sadd.f32 %s1915_s26, %s519_s2  ;;  %s1923_s21 = spop %1922 }
 0x442   :  { %s599_s25 = smul.f32 0.5, %s1921_s9  ;;  %s1925_s29 = spop %1924 }
 0x443   :  { %v1773_v30 = vrot.slane %v1772_v5, 1  ;;  %s1927_s14 = spop %1926  ;;  %s521_s19 = sadd.f32 %s520_s17, %s428_s13 }
 0x444   :  { %s600_s24 = sadd.f32 %s1919_s0, %s599_s25  ;;  %s1929_s30 = spop %1928 }
 0x445   :  { %v1774_v59 = vadd.f32 %v1773_v30, %v1772_v5  ;;  %s1342_s6 = smul.f32 0.5, %s1925_s29  ;;  %s1931_s12 = spop %1930 }
 0x446   :  { %s1375_s5 = smul.f32 0.5, %s1929_s30  ;;  %s1933_s8 = spop %1932 }
 0x447   :  { %s601_s27 = sadd.f32 %s600_s24, %s521_s19  ;;  %s1726_s10 = smul.f32 0.5, %s1933_s8 }
 0x448   :  { %s1343_s7 = sadd.f32 %s1923_s21, %s1342_s6  ;;  %s1813_s9 = sshll.u32 %s3487_s4, 4  ;;  %s1814_s9 = int_to_ptr.hbm [resolvable:$true] %s1813_s9 }
 0x449   :  { %s1376_s15 = sadd.f32 %s1927_s14, %s1375_s5  ;;  %s2191_s21 = sshra.s32 %s1814_s9, 4  ;;  %s2192_s21 = int_to_ptr.hbm [resolvable:$true] %s2191_s21 }
 0x44a   :  { %s1344_s22 = sadd.f32 %s1343_s7, %s601_s27  ;;  %s2193_s25 = scalar_lea.hbm %s2192_s21, 1 }
 0x44b   :  { %s1727_s23 = sadd.f32 %s1931_s12, %s1726_s10  ;;  %p2194_p10 = scmp.ne.s32.totalorder %s2192_s21, %s2193_s25 }
 0x44c   :  { %s1377_s3 = sadd.f32 %s1376_s15, %s1344_s22  ;;  %s2195_s29 = scalar_lea.hbm %s3487_s4, 1 }
 0x44d   :  { %p2196_p11 = scmp.lt.s32.totalorder %s2192_s21, %s3487_s4  ;;  %p2197_p12 = scmp.lt.s32.totalorder %s2195_s29, %s2193_s25 }
 0x44e   :  { %s1728_s28 = sadd.f32 %s1727_s23, %s1377_s3 }
 0x44f   :  { %p2198_p13 = por %p2197_p12, %p2196_p11 }
 0x451   :  { %p2199_p0 = pnand %p2198_p13, %p2194_p10 }
 0x497   :  { %v1751_v15 = vpop.xlane.xlu2 %1750  ;;  %v1737_v34 = vpop.xlane.xlu1 %1736 }
 0x498   :  { %v1752_v51 = vrot.slane %v1751_v15, 4  ;;  %v1738_v39 = vrot.slane %v1737_v34, 4 }
 0x49a   :  { %v1753_v13 = vadd.f32 %v1752_v51, %v1751_v15  ;;  %v1739_v0 = vadd.f32 %v1738_v39, %v1737_v34 }
 0x49c   :  { %v1754_v31 = vrot.slane %v1753_v13, 2  ;;  %v1740_v47 = vrot.slane %v1739_v0, 2 }
 0x49e   :  { %v1755_v35 = vadd.f32 %v1754_v31, %v1753_v13  ;;  %v1741_v4 = vadd.f32 %v1740_v47, %v1739_v0 }
 0x49f   :  { %v1795_v52 = vpop.xlane.xlu1 %1794 }
 0x4a0   :  { %v1796_v16 = vrot.slane %v1795_v52, 4  ;;  %v1742_v20 = vrot.slane %v1741_v4, 1  ;;  %v1756_v7 = vrot.slane %v1755_v35, 1 }
 0x4a2   :  { %v1797_v61 = vadd.f32 %v1796_v16, %v1795_v52  ;;  %v1743_v40 = vadd.f32 %v1742_v20, %v1741_v4  ;;  %v1757_v11 = vadd.f32 %v1756_v7, %v1755_v35 }
 0x4a4   :  { %v1798_v18 = vrot.slane %v1797_v61, 2  ;;  %1934 = vpush %v1743_v40 }
 0x4a5   :  { %1936 = vpush %v1757_v11 }
 0x4a6   :  { %v1799_v9 = vadd.f32 %v1798_v18, %v1797_v61  ;;  %1938 = vpush %v1774_v59 }
 0x4a8   :  { %v1800_v10 = vrot.slane %v1799_v9, 1 }
 0x4aa   :  { %v1801_v57 = vadd.f32 %v1800_v10, %v1799_v9 }
 0x4ac   :  { %1940 = vpush %v1801_v57 }
 0x4d5   :  { %s1935_s11 = spop %1934 }
 0x4d6   :  { %s1937_s16 = spop %1936 }
 0x4d7   :  { %s1759_s18 = smul.f32 0.5, %s1937_s16  ;;  %s1939_s26 = spop %1938 }
 0x4d9   :  { %s1760_s20 = sadd.f32 %s1935_s11, %s1759_s18 }
 0x4db   :  { %s1761_s0 = sadd.f32 %s1760_s20, %s1728_s28 }
 0x4dd   :  { %s1941_s1 = spop %1940 }
 0x4de   :  { %s1803_s2 = smul.f32 0.5, %s1941_s1 }
 0x4e0   :  { %s1804_s13 = sadd.f32 %s1939_s26, %s1803_s2 }
 0x4e2   :  { %s1805_s17 = sadd.f32 %s1804_s13, %s1761_s0 }
 0x4e4   :  { %1807 = sst [smem:[#allocation2]] %s1805_s17 }
 0x4e5   :  { %2202 = shalt.err (!%p2199_p0)
}
 0x4e6   :  { %s2245_s14 = smov [#allocation2]  }
 0x4e7   :  { %1816 = dma.smem_to_hbm %s2245_s14, 16, %s1814_s9, [#allocation4]  }
 0x4e8   :  { %2203 = dma.done.wait [#allocation4], 16  }
 0x4e9   :  { %2204 = vsyncadd [#allocation4], 4294967280 }
 0x4ea   :  { %2205 = dma.done.wait [#allocation3], 16  }
 0x4eb   :  { %2206 = vsyncadd [#allocation3], 4294967280 }
 0x4ec   :  { %2207 = dma.done.wait [#allocation7], 32  }
 0x4ed   :  { %2208 = vsyncadd [#allocation7], 4294967264 }
 0x4ee   :  { %1859 = sfence }
 0x4ef   :  { %1860 = vsyncpa [#allocation3], 1 }
 0x4f0   :  { %1861 = vsyncpa [#allocation7], 1 }
 0x4f1   :  { %1862 = vsyncpa [#allocation4], 1 }

</bundles_post_ra>
